<compile_context>
chip_gen: v6e
topology: v6e:2x2x1
jax: 0.10.0
libtpu: 0.0.40
codegen_flags: <defaults>
</compile_context>

<pallas_src>
import jax
import jax.numpy as jnp
from jax.experimental import pallas as pl
from jax.experimental.pallas import tpu as pltpu

# --- config (LSHNConfig defaults) -------------------------------------------
EMBEDDING_DIM = 384
HIDDEN_DIM = 256
PATTERN_DIM = 512
LN_EPS = 1e-5                 # PyTorch nn.LayerNorm default
DEFAULT_BLOCK_B = 512         # batch-tile rows (MXU/HBM friendly)


def _round_up(x, m):
    return ((x + m - 1) // m) * m


def _choose_tile(B, block_b):
    """Pad-free batch tile: rounded to 8 sublanes, capped at block_b, and split
    so large batches always produce >= 2 tiles (v7x megacore sharding)."""
    tb = min(block_b, _round_up(B, 8))
    if tb > 256 and pl.cdiv(B, tb) < 2:
        tb = max(256, _round_up(pl.cdiv(B, 2), 256))
    return tb


def lshn_kernel(x_ref,
                w1_ref, b1_ref,        # encoder.input_projection
                w2_ref, b2_ref,        # encoder.pattern_projection
                g_ref, beta_ref,       # encoder.layer_norm
                w3_ref, b3_ref,        # trace_formation[0]
                w4_ref, b4_ref,        # trace_formation[3]
                pat_ref, trace_ref):
    # bf16 MXU operands, f32 accumulation; all elementwise math stays f32.
    x = x_ref[...].astype(jnp.bfloat16)                                # [TB, E]

    # --- EpisodicMemoryEncoder ---
    h = jnp.dot(x, w1_ref[...], preferred_element_type=jnp.float32) + b1_ref[...]
    h = jnp.maximum(h, 0.0)                                            # ReLU (f32)
    p = jnp.dot(h.astype(jnp.bfloat16), w2_ref[...],
                preferred_element_type=jnp.float32) + b2_ref[...]
    # LayerNorm over last dim (biased variance, like torch.nn.LayerNorm),
    # one-pass variance: E[p^2] - E[p]^2 (clamped >= 0 against cancellation).
    mean = jnp.mean(p, axis=-1, keepdims=True)
    var = jnp.maximum(jnp.mean(p * p, axis=-1, keepdims=True) - mean * mean, 0.0)
    p = (p - mean) * jax.lax.rsqrt(var + LN_EPS) * g_ref[...] + beta_ref[...]
    pat_ref[...] = p.astype(pat_ref.dtype)                             # [TB, P]

    # --- trace_formation ---
    t = jnp.dot(p.astype(jnp.bfloat16), w3_ref[...],
                preferred_element_type=jnp.float32) + b3_ref[...]
    t = jnp.maximum(t, 0.0)                                            # ReLU (f32)
    t = jnp.dot(t.astype(jnp.bfloat16), w4_ref[...],
                preferred_element_type=jnp.float32) + b4_ref[...]
    trace_ref[...] = jnp.tanh(t).astype(trace_ref.dtype)               # [TB, P]


def lshn_forward(x, params, *, block_b=DEFAULT_BLOCK_B, out_dtype=jnp.float32):
    """x: [B, EMBEDDING_DIM] (f32 or bf16). Returns (episodic_patterns, episodic_traces).

    out_dtype=jnp.bfloat16 halves output HBM traffic (memory-bound win) but
    deviates from PyTorch's f32 return dtype -- keep f32 unless consumers agree.
    """
    B = x.shape[0]
    tb = _choose_tile(B, block_b)
    grid = (pl.cdiv(B, tb),)          # trailing partial block is masked by Pallas

    weights = (params["w1"], params["b1"],
               params["w2"], params["b2"],
               params["ln_g"], params["ln_b"],
               params["w3"], params["b3"],
               params["w4"], params["b4"])

    def pinned(a):
        # Whole array, constant block index -> stays VMEM-resident across tiles.
        return pl.BlockSpec(a.shape, lambda i: (0,) * a.ndim)

    in_specs = ([pl.BlockSpec((tb, EMBEDDING_DIM), lambda i: (i, 0))]
                + [pinned(a) for a in weights])
    out_specs = (pl.BlockSpec((tb, PATTERN_DIM), lambda i: (i, 0)),
                 pl.BlockSpec((tb, PATTERN_DIM), lambda i: (i, 0)))
    out_shapes = (jax.ShapeDtypeStruct((B, PATTERN_DIM), out_dtype),
                  jax.ShapeDtypeStruct((B, PATTERN_DIM), out_dtype))

    flops = 2 * B * (EMBEDDING_DIM * HIDDEN_DIM + HIDDEN_DIM * PATTERN_DIM
                     + PATTERN_DIM * HIDDEN_DIM + HIDDEN_DIM * PATTERN_DIM)
    out_itemsize = jnp.dtype(out_dtype).itemsize
    bytes_accessed = (int(x.size) * x.dtype.itemsize
                      + sum(int(a.size) * a.dtype.itemsize for a in weights)
                      + 2 * B * PATTERN_DIM * out_itemsize)

    patterns, traces = pl.pallas_call(
        lshn_kernel,
        out_shape=out_shapes,
        grid=grid,
        in_specs=in_specs,
        out_specs=out_specs,
        compiler_params=pltpu.CompilerParams(
            dimension_semantics=("parallel",),
            vmem_limit_bytes=32 << 20,
        ),
        cost_estimate=pl.CostEstimate(
            flops=flops,
            transcendentals=B * PATTERN_DIM + B,   # tanh + per-row rsqrt
            bytes_accessed=bytes_accessed,
        ),
    )(x, *weights)

    return patterns, traces


def init_params(key):
    """Deterministic synthetic parameters. Weights stored as bf16 [in, out]."""
    ks = jax.random.split(key, 8)

    def lin(k, fan_in, fan_out):
        # uniform(-1/sqrt(fan_in), 1/sqrt(fan_in)) like torch.nn.Linear
        kw, kb = jax.random.split(k)
        bound = 1.0 / jnp.sqrt(fan_in)
        w = jax.random.uniform(kw, (fan_in, fan_out), jnp.float32, -bound, bound)
        b = jax.random.uniform(kb, (1, fan_out), jnp.float32, -bound, bound)
        return w.astype(jnp.bfloat16), b      # bf16 MXU weights, f32 biases

    w1, b1 = lin(ks[0], EMBEDDING_DIM, HIDDEN_DIM)   # input_projection
    w2, b2 = lin(ks[1], HIDDEN_DIM, PATTERN_DIM)     # pattern_projection
    w3, b3 = lin(ks[2], PATTERN_DIM, HIDDEN_DIM)     # trace_formation Linear 1
    w4, b4 = lin(ks[3], HIDDEN_DIM, PATTERN_DIM)     # trace_formation Linear 2
    ln_g = jnp.ones((1, PATTERN_DIM), jnp.float32)
    ln_b = jnp.zeros((1, PATTERN_DIM), jnp.float32)
    return dict(w1=w1, b1=b1, w2=w2, b2=b2, ln_g=ln_g, ln_b=ln_b,
                w3=w3, b3=b3, w4=w4, b4=b4)


def _reference(x, p):
    """Pure-JAX reference with the same bf16-operand / f32-accumulate numerics.
    NOTE: intentionally deviates from exact f32 torch.nn.Linear numerics."""
    bf = jnp.bfloat16
    h = jnp.dot(x.astype(bf), p["w1"], preferred_element_type=jnp.float32) + p["b1"]
    h = jnp.maximum(h, 0.0)
    pat = jnp.dot(h.astype(bf), p["w2"], preferred_element_type=jnp.float32) + p["b2"]
    mu = jnp.mean(pat, axis=-1, keepdims=True)
    var = jnp.mean((pat - mu) ** 2, axis=-1, keepdims=True)
    pat = (pat - mu) / jnp.sqrt(var + LN_EPS) * p["ln_g"] + p["ln_b"]
    t = jnp.dot(pat.astype(bf), p["w3"], preferred_element_type=jnp.float32) + p["b3"]
    t = jnp.maximum(t, 0.0)
    t = jnp.dot(t.astype(bf), p["w4"], preferred_element_type=jnp.float32) + p["b4"]
    return pat, jnp.tanh(t)


if __name__ == "__main__":
    key = jax.random.PRNGKey(0)
    k_param, k_x = jax.random.split(key)
    params = init_params(k_param)

    batch = 8
    x = jax.random.normal(k_x, (batch, EMBEDDING_DIM), jnp.float32)

    patterns, traces = lshn_forward(x, params)
    jax.block_until_ready((patterns, traces))

    ref_pat, ref_tr = _reference(x, params)
    assert patterns.shape == (batch, PATTERN_DIM)
    assert traces.shape == (batch, PATTERN_DIM)
    assert jnp.allclose(patterns, ref_pat, atol=1e-2, rtol=1e-2)
    assert jnp.allclose(traces, ref_tr, atol=1e-2, rtol=1e-2)

    print("KERNEL_OK")
</pallas_src>

<mosaic_0001>
module attributes {stable_mosaic.version = 11 : i64} {
  func.func @lshn_kernel(%arg0: i32, %arg1: memref<8x384xf32, #tpu.memory_space<vmem>>, %arg2: memref<384x256xbf16, #tpu.memory_space<vmem>>, %arg3: memref<1x256xf32, #tpu.memory_space<vmem>>, %arg4: memref<256x512xbf16, #tpu.memory_space<vmem>>, %arg5: memref<1x512xf32, #tpu.memory_space<vmem>>, %arg6: memref<1x512xf32, #tpu.memory_space<vmem>>, %arg7: memref<1x512xf32, #tpu.memory_space<vmem>>, %arg8: memref<512x256xbf16, #tpu.memory_space<vmem>>, %arg9: memref<1x256xf32, #tpu.memory_space<vmem>>, %arg10: memref<256x512xbf16, #tpu.memory_space<vmem>>, %arg11: memref<1x512xf32, #tpu.memory_space<vmem>>, %arg12: memref<8x512xf32, #tpu.memory_space<vmem>>, %arg13: memref<8x512xf32, #tpu.memory_space<vmem>>) attributes {dimension_semantics = [#tpu.dimension_semantics<parallel>], iteration_bounds = array<i64: 1>, scalar_prefetch = 0 : i64, scratch_operands = 0 : i64, tpu.core_type = #tpu.core_type<tc>, window_params = [{transform_indices = @transform_0, window_bounds = array<i64: 8, 384>}, {pipeline_mode = #tpu.pipeline_mode<synchronous>, transform_indices = @transform_1, window_bounds = array<i64: 384, 256>}, {pipeline_mode = #tpu.pipeline_mode<synchronous>, transform_indices = @transform_2, window_bounds = array<i64: 1, 256>}, {pipeline_mode = #tpu.pipeline_mode<synchronous>, transform_indices = @transform_3, window_bounds = array<i64: 256, 512>}, {pipeline_mode = #tpu.pipeline_mode<synchronous>, transform_indices = @transform_4, window_bounds = array<i64: 1, 512>}, {pipeline_mode = #tpu.pipeline_mode<synchronous>, transform_indices = @transform_5, window_bounds = array<i64: 1, 512>}, {pipeline_mode = #tpu.pipeline_mode<synchronous>, transform_indices = @transform_6, window_bounds = array<i64: 1, 512>}, {pipeline_mode = #tpu.pipeline_mode<synchronous>, transform_indices = @transform_7, window_bounds = array<i64: 512, 256>}, {pipeline_mode = #tpu.pipeline_mode<synchronous>, transform_indices = @transform_8, window_bounds = array<i64: 1, 256>}, {pipeline_mode = #tpu.pipeline_mode<synchronous>, transform_indices = @transform_9, window_bounds = array<i64: 256, 512>}, {pipeline_mode = #tpu.pipeline_mode<synchronous>, transform_indices = @transform_10, window_bounds = array<i64: 1, 512>}, {transform_indices = @transform_11, window_bounds = array<i64: 8, 512>}, {transform_indices = @transform_12, window_bounds = array<i64: 8, 512>}]} {
    %c0 = arith.constant 0 : index
    %c0_0 = arith.constant 0 : index
    %0 = vector.load %arg1[%c0, %c0_0] : memref<8x384xf32, #tpu.memory_space<vmem>>, vector<8x384xf32>
    %1 = arith.truncf %0 : vector<8x384xf32> to vector<8x384xbf16>
    %c0_1 = arith.constant 0 : index
    %c0_2 = arith.constant 0 : index
    %2 = vector.load %arg2[%c0_1, %c0_2] : memref<384x256xbf16, #tpu.memory_space<vmem>>, vector<384x256xbf16>
    %cst = arith.constant dense<0.000000e+00> : vector<8x256xf32>
    %3 = tpu.matmul %1, %2, %cst {dimension_numbers = #tpu.dot_dimension_numbers<[1], [0], [0], [1], [0, 0, 1, 1], [], []>} : vector<8x384xbf16>, vector<384x256xbf16>, vector<8x256xf32> -> vector<8x256xf32>
    %c0_3 = arith.constant 0 : index
    %c0_4 = arith.constant 0 : index
    %4 = vector.load %arg3[%c0_3, %c0_4] : memref<1x256xf32, #tpu.memory_space<vmem>>, vector<1x256xf32>
    %5 = vector.broadcast %4 : vector<1x256xf32> to vector<8x256xf32>
    %6 = arith.addf %3, %5 : vector<8x256xf32>
    %cst_5 = arith.constant 0.000000e+00 : f32
    %7 = vector.broadcast %cst_5 : f32 to vector<8x256xf32>
    %8 = arith.maximumf %6, %7 : vector<8x256xf32>
    %9 = arith.truncf %8 : vector<8x256xf32> to vector<8x256xbf16>
    %c0_6 = arith.constant 0 : index
    %c0_7 = arith.constant 0 : index
    %10 = vector.load %arg4[%c0_6, %c0_7] : memref<256x512xbf16, #tpu.memory_space<vmem>>, vector<256x512xbf16>
    %cst_8 = arith.constant dense<0.000000e+00> : vector<8x512xf32>
    %11 = tpu.matmul %9, %10, %cst_8 {dimension_numbers = #tpu.dot_dimension_numbers<[1], [0], [0], [1], [0, 0, 1, 1], [], []>} : vector<8x256xbf16>, vector<256x512xbf16>, vector<8x512xf32> -> vector<8x512xf32>
    %c0_9 = arith.constant 0 : index
    %c0_10 = arith.constant 0 : index
    %12 = vector.load %arg5[%c0_9, %c0_10] : memref<1x512xf32, #tpu.memory_space<vmem>>, vector<1x512xf32>
    %13 = vector.broadcast %12 : vector<1x512xf32> to vector<8x512xf32>
    %14 = arith.addf %11, %13 : vector<8x512xf32>
    %cst_11 = arith.constant dense<0.000000e+00> : vector<8xf32>
    %15 = vector.multi_reduction <add>, %14, %cst_11 [1] : vector<8x512xf32> to vector<8xf32>
    %16 = vector.shape_cast %15 : vector<8xf32> to vector<8x1xf32>
    %cst_12 = arith.constant 5.120000e+02 : f32
    %17 = vector.broadcast %cst_12 : f32 to vector<8x1xf32>
    %18 = arith.divf %16, %17 : vector<8x1xf32>
    %19 = arith.mulf %14, %14 : vector<8x512xf32>
    %cst_13 = arith.constant dense<0.000000e+00> : vector<8xf32>
    %20 = vector.multi_reduction <add>, %19, %cst_13 [1] : vector<8x512xf32> to vector<8xf32>
    %21 = vector.shape_cast %20 : vector<8xf32> to vector<8x1xf32>
    %cst_14 = arith.constant 5.120000e+02 : f32
    %22 = vector.broadcast %cst_14 : f32 to vector<8x1xf32>
    %23 = arith.divf %21, %22 : vector<8x1xf32>
    %24 = arith.mulf %18, %18 : vector<8x1xf32>
    %25 = arith.subf %23, %24 : vector<8x1xf32>
    %cst_15 = arith.constant 0.000000e+00 : f32
    %26 = vector.broadcast %cst_15 : f32 to vector<8x1xf32>
    %27 = arith.maximumf %25, %26 : vector<8x1xf32>
    %28 = vector.broadcast %18 : vector<8x1xf32> to vector<8x512xf32>
    %29 = arith.subf %14, %28 : vector<8x512xf32>
    %cst_16 = arith.constant 9.99999974E-6 : f32
    %30 = vector.broadcast %cst_16 : f32 to vector<8x1xf32>
    %31 = arith.addf %27, %30 : vector<8x1xf32>
    %32 = math.rsqrt %31 : vector<8x1xf32>
    %33 = vector.broadcast %32 : vector<8x1xf32> to vector<8x512xf32>
    %34 = arith.mulf %29, %33 : vector<8x512xf32>
    %c0_17 = arith.constant 0 : index
    %c0_18 = arith.constant 0 : index
    %35 = vector.load %arg6[%c0_17, %c0_18] : memref<1x512xf32, #tpu.memory_space<vmem>>, vector<1x512xf32>
    %36 = vector.broadcast %35 : vector<1x512xf32> to vector<8x512xf32>
    %37 = arith.mulf %34, %36 : vector<8x512xf32>
    %c0_19 = arith.constant 0 : index
    %c0_20 = arith.constant 0 : index
    %38 = vector.load %arg7[%c0_19, %c0_20] : memref<1x512xf32, #tpu.memory_space<vmem>>, vector<1x512xf32>
    %39 = vector.broadcast %38 : vector<1x512xf32> to vector<8x512xf32>
    %40 = arith.addf %37, %39 : vector<8x512xf32>
    %c0_21 = arith.constant 0 : index
    %c0_22 = arith.constant 0 : index
    %41 = vector.load %arg12[%c0_21, %c0_22] : memref<8x512xf32, #tpu.memory_space<vmem>>, vector<8x512xf32>
    tpu.vector_store %arg12[%c0_21, %c0_22], %40 {strides = array<i32>} : memref<8x512xf32, #tpu.memory_space<vmem>>, vector<8x512xf32>,
    %42 = arith.truncf %40 : vector<8x512xf32> to vector<8x512xbf16>
    %c0_23 = arith.constant 0 : index
    %c0_24 = arith.constant 0 : index
    %43 = vector.load %arg8[%c0_23, %c0_24] : memref<512x256xbf16, #tpu.memory_space<vmem>>, vector<512x256xbf16>
    %cst_25 = arith.constant dense<0.000000e+00> : vector<8x256xf32>
    %44 = tpu.matmul %42, %43, %cst_25 {dimension_numbers = #tpu.dot_dimension_numbers<[1], [0], [0], [1], [0, 0, 1, 1], [], []>} : vector<8x512xbf16>, vector<512x256xbf16>, vector<8x256xf32> -> vector<8x256xf32>
    %c0_26 = arith.constant 0 : index
    %c0_27 = arith.constant 0 : index
    %45 = vector.load %arg9[%c0_26, %c0_27] : memref<1x256xf32, #tpu.memory_space<vmem>>, vector<1x256xf32>
    %46 = vector.broadcast %45 : vector<1x256xf32> to vector<8x256xf32>
    %47 = arith.addf %44, %46 : vector<8x256xf32>
    %cst_28 = arith.constant 0.000000e+00 : f32
    %48 = vector.broadcast %cst_28 : f32 to vector<8x256xf32>
    %49 = arith.maximumf %47, %48 : vector<8x256xf32>
    %50 = arith.truncf %49 : vector<8x256xf32> to vector<8x256xbf16>
    %c0_29 = arith.constant 0 : index
    %c0_30 = arith.constant 0 : index
    %51 = vector.load %arg10[%c0_29, %c0_30] : memref<256x512xbf16, #tpu.memory_space<vmem>>, vector<256x512xbf16>
    %cst_31 = arith.constant dense<0.000000e+00> : vector<8x512xf32>
    %52 = tpu.matmul %50, %51, %cst_31 {dimension_numbers = #tpu.dot_dimension_numbers<[1], [0], [0], [1], [0, 0, 1, 1], [], []>} : vector<8x256xbf16>, vector<256x512xbf16>, vector<8x512xf32> -> vector<8x512xf32>
    %c0_32 = arith.constant 0 : index
    %c0_33 = arith.constant 0 : index
    %53 = vector.load %arg11[%c0_32, %c0_33] : memref<1x512xf32, #tpu.memory_space<vmem>>, vector<1x512xf32>
    %54 = vector.broadcast %53 : vector<1x512xf32> to vector<8x512xf32>
    %55 = arith.addf %52, %54 : vector<8x512xf32>
    %56 = math.tanh %55 : vector<8x512xf32>
    %c0_34 = arith.constant 0 : index
    %c0_35 = arith.constant 0 : index
    %57 = vector.load %arg13[%c0_34, %c0_35] : memref<8x512xf32, #tpu.memory_space<vmem>>, vector<8x512xf32>
    tpu.vector_store %arg13[%c0_34, %c0_35], %56 {strides = array<i32>} : memref<8x512xf32, #tpu.memory_space<vmem>>, vector<8x512xf32>,
    return
  }
  func.func @transform_0(%arg0: i32) -> (i32, i32) {
    %c0_i32 = arith.constant 0 : i32
    %c0_i32_0 = arith.constant 0 : i32
    return %arg0, %c0_i32 : i32, i32
  }
  func.func @transform_1(%arg0: i32) -> (i32, i32) {
    %c0_i32 = arith.constant 0 : i32
    %c0_i32_0 = arith.constant 0 : i32
    %c0_i32_1 = arith.constant 0 : i32
    return %c0_i32, %c0_i32_0 : i32, i32
  }
  func.func @transform_2(%arg0: i32) -> (i32, i32) {
    %c0_i32 = arith.constant 0 : i32
    %c0_i32_0 = arith.constant 0 : i32
    %c0_i32_1 = arith.constant 0 : i32
    return %c0_i32, %c0_i32_0 : i32, i32
  }
  func.func @transform_3(%arg0: i32) -> (i32, i32) {
    %c0_i32 = arith.constant 0 : i32
    %c0_i32_0 = arith.constant 0 : i32
    %c0_i32_1 = arith.constant 0 : i32
    return %c0_i32, %c0_i32_0 : i32, i32
  }
  func.func @transform_4(%arg0: i32) -> (i32, i32) {
    %c0_i32 = arith.constant 0 : i32
    %c0_i32_0 = arith.constant 0 : i32
    %c0_i32_1 = arith.constant 0 : i32
    return %c0_i32, %c0_i32_0 : i32, i32
  }
  func.func @transform_5(%arg0: i32) -> (i32, i32) {
    %c0_i32 = arith.constant 0 : i32
    %c0_i32_0 = arith.constant 0 : i32
    %c0_i32_1 = arith.constant 0 : i32
    return %c0_i32, %c0_i32_0 : i32, i32
  }
  func.func @transform_6(%arg0: i32) -> (i32, i32) {
    %c0_i32 = arith.constant 0 : i32
    %c0_i32_0 = arith.constant 0 : i32
    %c0_i32_1 = arith.constant 0 : i32
    return %c0_i32, %c0_i32_0 : i32, i32
  }
  func.func @transform_7(%arg0: i32) -> (i32, i32) {
    %c0_i32 = arith.constant 0 : i32
    %c0_i32_0 = arith.constant 0 : i32
    %c0_i32_1 = arith.constant 0 : i32
    return %c0_i32, %c0_i32_0 : i32, i32
  }
  func.func @transform_8(%arg0: i32) -> (i32, i32) {
    %c0_i32 = arith.constant 0 : i32
    %c0_i32_0 = arith.constant 0 : i32
    %c0_i32_1 = arith.constant 0 : i32
    return %c0_i32, %c0_i32_0 : i32, i32
  }
  func.func @transform_9(%arg0: i32) -> (i32, i32) {
    %c0_i32 = arith.constant 0 : i32
    %c0_i32_0 = arith.constant 0 : i32
    %c0_i32_1 = arith.constant 0 : i32
    return %c0_i32, %c0_i32_0 : i32, i32
  }
  func.func @transform_10(%arg0: i32) -> (i32, i32) {
    %c0_i32 = arith.constant 0 : i32
    %c0_i32_0 = arith.constant 0 : i32
    %c0_i32_1 = arith.constant 0 : i32
    return %c0_i32, %c0_i32_0 : i32, i32
  }
  func.func @transform_11(%arg0: i32) -> (i32, i32) {
    %c0_i32 = arith.constant 0 : i32
    %c0_i32_0 = arith.constant 0 : i32
    return %arg0, %c0_i32 : i32, i32
  }
  func.func @transform_12(%arg0: i32) -> (i32, i32) {
    %c0_i32 = arith.constant 0 : i32
    %c0_i32_0 = arith.constant 0 : i32
    return %arg0, %c0_i32 : i32, i32
  }
}

</mosaic_0001>

<bundles_post_ra>
// kernel: tpu_custom_call.1
= control target key start
LH: loop header
LB: loop body
LE: loop exit
PB: predicated region body
PF: predicated region fallthrough
CT: control target
= control target key end

     0   :  { %18 = vsyncpa [#allocation3], 0  ;;  %s3116_s0 = inlined_call_operand.hbm [shape: f32[8,384], index: 0, kind: input, shape index: {}]   ;;  %s3117_s1 = inlined_call_operand.hbm [shape: bf16[384,256], index: 1, kind: input, shape index: {}]   ;;  %s3118_s2 = inlined_call_operand.hbm [shape: f32[1,256], index: 2, kind: input, shape index: {}]   ;;  %s3119_s3 = inlined_call_operand.hbm [shape: bf16[256,512], index: 3, kind: input, shape index: {}]   ;;  %s3120_s4 = inlined_call_operand.vmem [shape: f32[1,512], index: 4, kind: input, shape index: {}]   ;;  %s3121_s5 = inlined_call_operand.vmem [shape: f32[1,512], index: 5, kind: input, shape index: {}]   ;;  %s3122_s6 = inlined_call_operand.hbm [shape: f32[1,512], index: 6, kind: input, shape index: {}]   ;;  %s3123_s7 = inlined_call_operand.hbm [shape: bf16[512,256], index: 7, kind: input, shape index: {}]   ;;  %s3124_s8 = inlined_call_operand.vmem [shape: f32[1,256], index: 8, kind: input, shape index: {}]   ;;  %s3125_s9 = inlined_call_operand.hbm [shape: bf16[256,512], index: 9, kind: input, shape index: {}]   ;;  %s3126_s10 = inlined_call_operand.vmem [shape: f32[1,512], index: 10, kind: input, shape index: {}]   ;;  %s3127_s11 = inlined_call_operand.hbm [shape: f32[8,512], index: 11, kind: output, shape index: {0}]   ;;  %s3128_s12 = inlined_call_operand.hbm [shape: f32[8,512], index: 12, kind: output, shape index: {1}]  }
   0x1   :  { %19 = vsyncpa [#allocation6], 0 }
   0x2   :  { %20 = vsyncpa [#allocation9], 0 }
   0x3   :  { %21 = vsyncpa [#allocation12], 0 }
   0x4   :  { %22 = vsyncpa [#allocation4], 0 }
   0x5   :  { %23 = vsyncpa [#allocation16], 0  ;;  %s2928_s21 = smov [#allocation5]  }
   0x6   :  { %s39_s22 = sshll.u32 %s2928_s21, 4  ;;  %s40_s22 = int_to_ptr.vmem [resolvable:$true] %s39_s22 }
   0x7   :  { %s2744_s23 = scalar_lea.vmem %s40_s22, 6144  ;;  %p2749_p1 = scmp.lt.s32.totalorder %s40_s22, %s40_s22 }
   0x8   :  { %p2745_p0 = scmp.ne.s32.totalorder %s40_s22, %s2744_s23  ;;  %p2750_p2 = scmp.lt.s32.totalorder %s2744_s23, %s2744_s23 }
   0xa   :  { %p2751_p3 = por %p2750_p2, %p2749_p1 }
   0xc   :  { %p2752_p4 = pnand %p2751_p3, %p2745_p0 }
   0xe   :  { %2755 = shalt.err (!%p2752_p4)
}
   0xf   :  { %s2929_s24 = smov 128   ;;  %s2930_s25 = smov 8  }
  0x10   :  { %45 = dma.hbm_to_vmem [thread:$0]  %s3117_s1, 6144, %s40_s22, [#allocation6], %s2929_s24, %s2929_s24, %s2930_s25  }
  0x11   :  { %s2931_s28 = smov [#allocation8]  }
  0x12   :  { %s61_s29 = sshll.u32 %s2931_s28, 4  ;;  %s62_s29 = int_to_ptr.vmem [resolvable:$true] %s61_s29 }
  0x13   :  { %s2764_s30 = scalar_lea.vmem %s62_s29, 8192  ;;  %p2769_p6 = scmp.lt.s32.totalorder %s62_s29, %s62_s29 }
  0x14   :  { %p2765_p5 = scmp.ne.s32.totalorder %s62_s29, %s2764_s30  ;;  %p2770_p7 = scmp.lt.s32.totalorder %s2764_s30, %s2764_s30 }
  0x16   :  { %p2771_p8 = por %p2770_p7, %p2769_p6 }
  0x18   :  { %p2772_p9 = pnand %p2771_p8, %p2765_p5 }
  0x1a   :  { %2775 = shalt.err (!%p2772_p9)
}
  0x1b   :  { %s2932_s13 = smov 256   ;;  %s2933_s14 = smov 16  }
  0x1c   :  { %67 = dma.hbm_to_vmem [thread:$0]  %s3119_s3, 8192, %s62_s29, [#allocation9], %s2932_s13, %s2932_s13, %s2933_s14  }
  0x1d   :  { %s2934_s1 = smov [#allocation11]   ;;  %s2935_s18 = smov [#allocation2]  }
  0x1e   :  { %s87_s17 = sshll.u32 %s2934_s1, 4  ;;  %s30_s19 = sshll.u32 %s2935_s18, 4  ;;  %s88_s17 = int_to_ptr.vmem [resolvable:$true] %s87_s17  ;;  %s31_s19 = int_to_ptr.vmem [resolvable:$true] %s30_s19 }
  0x1f   :  { %s2784_s20 = scalar_lea.vmem %s88_s17, 8192  ;;  %p2789_p11 = scmp.lt.s32.totalorder %s88_s17, %s88_s17 }
  0x20   :  { %p2785_p10 = scmp.ne.s32.totalorder %s88_s17, %s2784_s20  ;;  %p2790_p12 = scmp.lt.s32.totalorder %s2784_s20, %s2784_s20 }
  0x22   :  { %p2791_p13 = por %p2790_p12, %p2789_p11 }
  0x24   :  { %p2792_p0 = pnand %p2791_p13, %p2785_p10 }
  0x26   :  { %2795 = shalt.err (!%p2792_p0)
}
  0x27   :  { %93 = dma.hbm_to_vmem [thread:$0]  %s3123_s7, 8192, %s88_s17, [#allocation12], %s2929_s24, %s2929_s24, %s2930_s25  }
  0x28   :  { %s2804_s3 = scalar_lea.vmem %s31_s19, 384  ;;  %p2809_p2 = scmp.lt.s32.totalorder %s31_s19, %s31_s19 }
  0x29   :  { %p2805_p1 = scmp.ne.s32.totalorder %s31_s19, %s2804_s3  ;;  %p2810_p3 = scmp.lt.s32.totalorder %s2804_s3, %s2804_s3 }
  0x2b   :  { %p2811_p4 = por %p2810_p3, %p2809_p2 }
  0x2d   :  { %p2812_p5 = pnand %p2811_p4, %p2805_p1 }
  0x2f   :  { %2815 = shalt.err (!%p2812_p5)
}
  0x30   :  { %33 = dma.hbm_to_vmem [thread:$0]  %s3116_s0, 384, %s31_s19, [#allocation3]  }
  0x31   :  { %s2936_s27 = smov [#allocation7]   ;;  %s2937_s29 = smov [#allocation10]  }
  0x32   :  { %s52_s28 = sshll.u32 %s2936_s27, 4  ;;  %s78_s30 = sshll.u32 %s2937_s29, 4  ;;  %s53_s28 = int_to_ptr.vmem [resolvable:$true] %s52_s28  ;;  %s79_s30 = int_to_ptr.vmem [resolvable:$true] %s78_s30 }
  0x33   :  { %s2824_s15 = scalar_lea.vmem %s53_s28, 32  ;;  %p2829_p7 = scmp.lt.s32.totalorder %s53_s28, %s53_s28 }
  0x34   :  { %p2825_p6 = scmp.ne.s32.totalorder %s53_s28, %s2824_s15  ;;  %p2830_p8 = scmp.lt.s32.totalorder %s2824_s15, %s2824_s15 }
  0x36   :  { %p2831_p9 = por %p2830_p8, %p2829_p7 }
  0x38   :  { %p2832_p10 = pnand %p2831_p9, %p2825_p6 }
  0x3a   :  { %2835 = shalt.err (!%p2832_p10)
}
  0x3b   :  { %55 = dma.hbm_to_vmem [thread:$0]  %s3118_s2, 32, %s53_s28, [#allocation6]  }
  0x3c   :  { %s2844_s25 = scalar_lea.vmem %s79_s30, 64  ;;  %p2849_p12 = scmp.lt.s32.totalorder %s79_s30, %s79_s30 }
  0x3d   :  { %p2845_p11 = scmp.ne.s32.totalorder %s79_s30, %s2844_s25  ;;  %p2850_p13 = scmp.lt.s32.totalorder %s2844_s25, %s2844_s25 }
  0x3f   :  { %p2851_p0 = por %p2850_p13, %p2849_p12 }
  0x41   :  { %p2852_p1 = pnand %p2851_p0, %p2845_p11 }
  0x43   :  { %2855 = shalt.err (!%p2852_p1)
}
  0x44   :  { %81 = dma.hbm_to_vmem [thread:$0]  %s3122_s6, 64, %s79_s30, [#allocation9]  }
  0x45   :  { %s2938_s1 = smov [#allocation13]  }
  0x46   :  { %s101_s17 = sshll.u32 %s2938_s1, 4  ;;  %s102_s17 = int_to_ptr.vmem [resolvable:$true] %s101_s17 }
  0x47   :  { %s2864_s18 = scalar_lea.vmem %s102_s17, 8192  ;;  %p2869_p3 = scmp.lt.s32.totalorder %s102_s17, %s102_s17 }
  0x48   :  { %p2865_p2 = scmp.ne.s32.totalorder %s102_s17, %s2864_s18  ;;  %p2870_p4 = scmp.lt.s32.totalorder %s2864_s18, %s2864_s18 }
  0x4a   :  { %p2871_p5 = por %p2870_p4, %p2869_p3 }
  0x4c   :  { %p2872_p6 = pnand %p2871_p5, %p2865_p2 }
  0x4e   :  { %2875 = shalt.err (!%p2872_p6)
}
  0x4f   :  { %107 = dma.hbm_to_vmem [thread:$0]  %s3125_s9, 8192, %s102_s17, [#allocation12], %s2932_s13, %s2932_s13, %s2933_s14  }
  0x50   :  { %2916 = dma.done.wait [#allocation3], 384  }
  0x51   :  { %2917 = vsyncadd [#allocation3], 4294966912 }
  0x52   :  { %2918 = dma.done.wait [#allocation6], 6176  }
  0x53   :  { %2919 = vsyncadd [#allocation6], 4294961120 }
  0x54   :  { %2920 = dma.done.wait [#allocation9], 8256  }
  0x55   :  { %2921 = vsyncadd [#allocation9], 4294959040 }
  0x56   :  { %2922 = dma.done.wait [#allocation12], 16384  }
  0x57   :  { %2923 = vsyncadd [#allocation12], 4294950912  ;;  %v2939_v0 = vmov 0   ;;  %v2366_v1 = vld [vmem:[#allocation5 + $0x74] ss:$8 sps:$4 sm:$0xff]   ;;  %v132_v63 = vld [vmem:[#allocation2] sm:$0xff] }
  0x58   :  { %511 = vmatprep.mubr.bf16.mxu1 %v2939_v0  ;;  %v2368_v2 = vld [vmem:[#allocation5 + $0x70] ss:$8 sps:$4 sm:$0xff]   ;;  %438 = vmatprep.subr.bf16.mxu0 %v2366_v1  ;;  %v2369_v3 = vld [vmem:[#allocation5 + $0x64] ss:$8 sps:$4 sm:$0xff]   ;;  %v2371_v4 = vld [vmem:[#allocation5 + $0x60] ss:$8 sps:$4 sm:$0xff]  }
  0x59   :  { %439 = vmatpush1.bf16.msra.mxu0 %v2368_v2  ;;  %v2372_v5 = vld [vmem:[#allocation5 + $0x54] ss:$8 sps:$4 sm:$0xff]   ;;  %v2374_v6 = vld [vmem:[#allocation5 + $0x50] ss:$8 sps:$4 sm:$0xff]   ;;  %v2375_v7 = vld [vmem:[#allocation5 + $0x44] ss:$8 sps:$4 sm:$0xff]   ;;  %v135_v2 = vpack.c.bf16 %v132_v63, %v132_v63 }
  0x5a   :  { %440 = vmatprep.subr.bf16.mxu0 %v2369_v3  ;;  %v2377_v8 = vld [vmem:[#allocation5 + $0x40] ss:$8 sps:$4 sm:$0xff]   ;;  %v2389_v9 = vld [vmem:[#allocation5 + $0x174] ss:$8 sps:$4 sm:$0xff]   ;;  %v2392_v10 = vld [vmem:[#allocation5 + $0x170] ss:$8 sps:$4 sm:$0xff]  }
  0x5b   :  { %v2378_v11 = vld [vmem:[#allocation5 + $0x34] ss:$8 sps:$4 sm:$0xff]   ;;  %479 = vmatprep.subr.bf16.mxu1 %v2389_v9  ;;  %v2395_v12 = vld [vmem:[#allocation5 + $0x164] ss:$8 sps:$4 sm:$0xff]   ;;  %v2398_v13 = vld [vmem:[#allocation5 + $0x160] ss:$8 sps:$4 sm:$0xff]  }
  0x5c   :  { %480 = vmatpush1.bf16.msra.mxu1 %v2392_v10  ;;  %v2380_v14 = vld [vmem:[#allocation5 + $0x30] ss:$8 sps:$4 sm:$0xff]   ;;  %v2381_v15 = vld [vmem:[#allocation5 + $0x24] ss:$8 sps:$4 sm:$0xff]   ;;  %v2401_v16 = vld [vmem:[#allocation5 + $0x154] ss:$8 sps:$4 sm:$0xff]  }
  0x5d   :  { %441 = vmatpush1.bf16.msra.mxu0 %v2371_v4  ;;  %481 = vmatprep.subr.bf16.mxu1 %v2395_v12  ;;  %v2404_v17 = vld [vmem:[#allocation5 + $0x150] ss:$8 sps:$4 sm:$0xff]   ;;  %v2383_v18 = vld [vmem:[#allocation5 + $0x20] ss:$8 sps:$4 sm:$0xff]   ;;  %v2407_v19 = vld [vmem:[#allocation5 + $0x144] ss:$8 sps:$4 sm:$0xff]  }
  0x5e   :  { %442 = vmatprep.subr.bf16.mxu0 %v2372_v5  ;;  %v2384_v20 = vld [vmem:[#allocation5 + $0x14] ss:$8 sps:$4 sm:$0xff]   ;;  %v2386_v21 = vld [vmem:[#allocation5 + $0x10] ss:$8 sps:$4 sm:$0xff]   ;;  %v2410_v22 = vld [vmem:[#allocation5 + $0x140] ss:$8 sps:$4 sm:$0xff]  }
  0x5f   :  { %v2413_v23 = vld [vmem:[#allocation5 + $0x134] ss:$8 sps:$4 sm:$0xff]   ;;  %v2387_v24 = vld [vmem:[#allocation5 + $0x4] ss:$8 sps:$4 sm:$0xff]   ;;  %v2416_v25 = vld [vmem:[#allocation5 + $0x130] ss:$8 sps:$4 sm:$0xff]  }
  0x60   :  { %482 = vmatpush1.bf16.msra.mxu1 %v2398_v13  ;;  %v2391_v26 = vld [vmem:[#allocation5] ss:$8 sps:$4 sm:$0xff]   ;;  %v2419_v27 = vld [vmem:[#allocation5 + $0x124] ss:$8 sps:$4 sm:$0xff]   ;;  %v2393_v28 = vld [vmem:[#allocation5 + $0xf4] ss:$8 sps:$4 sm:$0xff]  }
  0x61   :  { %443 = vmatpush1.bf16.msra.mxu0 %v2374_v6  ;;  %483 = vmatprep.subr.bf16.mxu1 %v2401_v16  ;;  %v2422_v29 = vld [vmem:[#allocation5 + $0x120] ss:$8 sps:$4 sm:$0xff]   ;;  %v2397_v30 = vld [vmem:[#allocation5 + $0xf0] ss:$8 sps:$4 sm:$0xff]   ;;  %v2425_v31 = vld [vmem:[#allocation5 + $0x114] ss:$8 sps:$4 sm:$0xff]  }
  0x62   :  { %444 = vmatprep.subr.bf16.mxu0 %v2375_v7  ;;  %v2399_v32 = vld [vmem:[#allocation5 + $0xe4] ss:$8 sps:$4 sm:$0xff]   ;;  %v133_v33 = vld [vmem:[#allocation2 + $0x8] sm:$0xff]  ;;  %v2403_v36 = vld [vmem:[#allocation5 + $0xe0] ss:$8 sps:$4 sm:$0xff]  }
  0x63   :  { %v136_v34 = vpack.c.bf16 %v133_v33, %v133_v33  ;;  %v2428_v35 = vld [vmem:[#allocation5 + $0x110] ss:$8 sps:$4 sm:$0xff]   ;;  %v2431_v37 = vld [vmem:[#allocation5 + $0x104] ss:$8 sps:$4 sm:$0xff]   ;;  %v2405_v38 = vld [vmem:[#allocation5 + $0xd4] ss:$8 sps:$4 sm:$0xff]  }
  0x64   :  { %484 = vmatpush1.bf16.msra.mxu1 %v2404_v17  ;;  %v2434_v39 = vld [vmem:[#allocation5 + $0x100] ss:$8 sps:$4 sm:$0xff]   ;;  %v134_v40 = vld [vmem:[#allocation2 + $0x10] sm:$0xff]  ;;  %v2411_v43 = vld [vmem:[#allocation5 + $0xc4] ss:$8 sps:$4 sm:$0xff]  }
  0x65   :  { %445 = vmatpush1.bf16.msra.mxu0 %v2377_v8  ;;  %485 = vmatprep.subr.bf16.mxu1 %v2407_v19  ;;  %v2409_v41 = vld [vmem:[#allocation5 + $0xd0] ss:$8 sps:$4 sm:$0xff]   ;;  %v137_v44 = vpack.c.bf16 %v134_v40, %v134_v40  ;;  %v2415_v46 = vld [vmem:[#allocation5 + $0xc0] ss:$8 sps:$4 sm:$0xff]   ;;  %v2417_v48 = vld [vmem:[#allocation5 + $0xb4] ss:$8 sps:$4 sm:$0xff]  }
  0x66   :  { %446 = vmatprep.subr.bf16.mxu0 %v2378_v11  ;;  %470 = vmatprep.mubr.bf16.mxu0 %v136_v34  ;;  %v2440_v42 = vld [vmem:[#allocation8 + $0xe4] ss:$16 sps:$4 sm:$0xff]   ;;  %v2438_v45 = vld [vmem:[#allocation8 + $0xe0] ss:$16 sps:$4 sm:$0xff]   ;;  %v2443_v1 = vld [vmem:[#allocation8 + $0xec] ss:$16 sps:$4 sm:$0xff]  }
  0x67   :  { %v2446_v47 = vld [vmem:[#allocation8 + $0xc4] ss:$16 sps:$4 sm:$0xff]   ;;  %v2444_v49 = vld [vmem:[#allocation8 + $0xc0] ss:$16 sps:$4 sm:$0xff]   ;;  %v2441_v4 = vld [vmem:[#allocation8 + $0xe8] ss:$16 sps:$4 sm:$0xff]  }
  0x68   :  { %486 = vmatpush1.bf16.msra.mxu1 %v2410_v22  ;;  %v2421_v50 = vld [vmem:[#allocation5 + $0xb0] ss:$8 sps:$4 sm:$0xff]   ;;  %v2423_v52 = vld [vmem:[#allocation5 + $0xa4] ss:$8 sps:$4 sm:$0xff]   ;;  %v2427_v54 = vld [vmem:[#allocation5 + $0xa0] ss:$8 sps:$4 sm:$0xff]  }
  0x69   :  { %447 = vmatpush1.bf16.msra.mxu0 %v2380_v14  ;;  %487 = vmatprep.subr.bf16.mxu1 %v2413_v23  ;;  %v2452_v51 = vld [vmem:[#allocation8 + $0xa4] ss:$16 sps:$4 sm:$0xff]   ;;  %v2450_v53 = vld [vmem:[#allocation8 + $0xa0] ss:$16 sps:$4 sm:$0xff]   ;;  %v2449_v6 = vld [vmem:[#allocation8 + $0xcc] ss:$16 sps:$4 sm:$0xff]  }
  0x6a   :  { %448 = vmatprep.subr.bf16.mxu0 %v2381_v15  ;;  %v2458_v55 = vld [vmem:[#allocation8 + $0x84] ss:$16 sps:$4 sm:$0xff]   ;;  %v2456_v57 = vld [vmem:[#allocation8 + $0x80] ss:$16 sps:$4 sm:$0xff]   ;;  %v2447_v8 = vld [vmem:[#allocation8 + $0xc8] ss:$16 sps:$4 sm:$0xff]  }
  0x6b   :  { %v2429_v56 = vld [vmem:[#allocation5 + $0x94] ss:$8 sps:$4 sm:$0xff]   ;;  %v2433_v58 = vld [vmem:[#allocation5 + $0x90] ss:$8 sps:$4 sm:$0xff]   ;;  %v2435_v60 = vld [vmem:[#allocation5 + $0x84] ss:$8 sps:$4 sm:$0xff]  }
  0x6c   :  { %488 = vmatpush1.bf16.msra.mxu1 %v2416_v25  ;;  %v2464_v59 = vld [vmem:[#allocation8 + $0x64] ss:$16 sps:$4 sm:$0xff]   ;;  %v2462_v62 = vld [vmem:[#allocation8 + $0x60] ss:$16 sps:$4 sm:$0xff]   ;;  %v2455_v10 = vld [vmem:[#allocation8 + $0xac] ss:$16 sps:$4 sm:$0xff]  }
  0x6d   :  { %449 = vmatpush1.bf16.msra.mxu0 %v2383_v18  ;;  %489 = vmatprep.subr.bf16.mxu1 %v2419_v27  ;;  %v2437_v61 = vld [vmem:[#allocation5 + $0x80] ss:$8 sps:$4 sm:$0xff]  }
  0x6e   :  { %450 = vmatprep.subr.bf16.mxu0 %v2384_v20  ;;  %v2470_v0 = vld [vmem:[#allocation8 + $0x44] ss:$16 sps:$4 sm:$0xff]   ;;  %v2468_v3 = vld [vmem:[#allocation8 + $0x40] ss:$16 sps:$4 sm:$0xff]   ;;  %v2453_v12 = vld [vmem:[#allocation8 + $0xa8] ss:$16 sps:$4 sm:$0xff]  }
  0x6f   :  { %v2476_v5 = vld [vmem:[#allocation8 + $0x24] ss:$16 sps:$4 sm:$0xff]   ;;  %v2474_v7 = vld [vmem:[#allocation8 + $0x20] ss:$16 sps:$4 sm:$0xff]   ;;  %v2461_v14 = vld [vmem:[#allocation8 + $0x8c] ss:$16 sps:$4 sm:$0xff]  }
  0x70   :  { %490 = vmatpush1.bf16.msra.mxu1 %v2422_v29  ;;  %v2482_v9 = vld [vmem:[#allocation8 + $0x4] ss:$16 sps:$4 sm:$0xff]   ;;  %v2480_v11 = vld [vmem:[#allocation8] ss:$16 sps:$4 sm:$0xff]   ;;  %v2459_v16 = vld [vmem:[#allocation8 + $0x88] ss:$16 sps:$4 sm:$0xff]  }
  0x71   :  { %451 = vmatpush1.bf16.msra.mxu0 %v2386_v21  ;;  %491 = vmatprep.subr.bf16.mxu1 %v2425_v31  ;;  %v2488_v13 = vld [vmem:[#allocation8 + $0x1e4] ss:$16 sps:$4 sm:$0xff]   ;;  %v2486_v15 = vld [vmem:[#allocation8 + $0x1e0] ss:$16 sps:$4 sm:$0xff]   ;;  %v2467_v18 = vld [vmem:[#allocation8 + $0x6c] ss:$16 sps:$4 sm:$0xff]  }
  0x72   :  { %452 = vmatprep.subr.bf16.mxu0 %v2387_v24  ;;  %v2494_v17 = vld [vmem:[#allocation8 + $0x1c4] ss:$16 sps:$4 sm:$0xff]   ;;  %v2492_v19 = vld [vmem:[#allocation8 + $0x1c0] ss:$16 sps:$4 sm:$0xff]   ;;  %v2465_v20 = vld [vmem:[#allocation8 + $0x68] ss:$16 sps:$4 sm:$0xff]  }
  0x73   :  { %v2500_v21 = vld [vmem:[#allocation8 + $0x1a4] ss:$16 sps:$4 sm:$0xff]   ;;  %v2473_v22 = vld [vmem:[#allocation8 + $0x4c] ss:$16 sps:$4 sm:$0xff]   ;;  %v2498_v23 = vld [vmem:[#allocation8 + $0x1a0] ss:$16 sps:$4 sm:$0xff]  }
  0x74   :  { %492 = vmatpush1.bf16.msra.mxu1 %v2428_v35  ;;  %v2471_v24 = vld [vmem:[#allocation8 + $0x48] ss:$16 sps:$4 sm:$0xff]   ;;  %v2506_v25 = vld [vmem:[#allocation8 + $0x184] ss:$16 sps:$4 sm:$0xff]   ;;  %v2504_v27 = vld [vmem:[#allocation8 + $0x180] ss:$16 sps:$4 sm:$0xff]  }
  0x75   :  { %453 = vmatpush1.bf16.msra.mxu0 %v2391_v26  ;;  %493 = vmatprep.subr.bf16.mxu1 %v2431_v37  ;;  %v2479_v26 = vld [vmem:[#allocation8 + $0x2c] ss:$16 sps:$4 sm:$0xff]   ;;  %v2495_v34 = vld [vmem:[#allocation8 + $0x1c8] ss:$16 sps:$4 sm:$0xff]   ;;  %v2512_v40 = vld [vmem:[#allocation8 + $0x164] ss:$16 sps:$4 sm:$0xff]  }
  0x76   :  { %454 = vmatprep.subr.bf16.mxu0 %v2393_v28  ;;  %v2477_v28 = vld [vmem:[#allocation8 + $0x28] ss:$16 sps:$4 sm:$0xff]   ;;  %v2485_v29 = vld [vmem:[#allocation8 + $0xc] ss:$16 sps:$4 sm:$0xff]  }
  0x77   :  { %v2491_v31 = vld [vmem:[#allocation8 + $0x1ec] ss:$16 sps:$4 sm:$0xff]  }
  0x78   :  { %494 = vmatpush1.bf16.msra.mxu1 %v2434_v39  ;;  %v2497_v33 = vld [vmem:[#allocation8 + $0x1cc] ss:$16 sps:$4 sm:$0xff]   ;;  %v2510_v39 = vld [vmem:[#allocation8 + $0x160] ss:$16 sps:$4 sm:$0xff]  }
  0x79   :  { %455 = vmatpush2.bf16.msra.mxu0 %v2397_v30  ;;  %930 = vmatprep.subr.bf16.mxu1 %v2440_v42  ;;  %v2483_v30 = vld [vmem:[#allocation8 + $0x8] ss:$16 sps:$4 sm:$0xff]   ;;  %v2503_v35 = vld [vmem:[#allocation8 + $0x1ac] ss:$16 sps:$4 sm:$0xff]  }
  0x7a   :  { %456 = vmatprep.subr.bf16.mxu0 %v2399_v32  ;;  %v2489_v32 = vld [vmem:[#allocation8 + $0x1e8] ss:$16 sps:$4 sm:$0xff]   ;;  %v2509_v37 = vld [vmem:[#allocation8 + $0x18c] ss:$16 sps:$4 sm:$0xff]  }
  0x7b   :  { %512 = vmatmul.mubr.bf16.vlgmr.msra.gmra.mxu1 %v137_v44  ;;  %v2513_v42 = vld [vmem:[#allocation8 + $0x168] ss:$16 sps:$4 sm:$0xff]   ;;  %v2521_v44 = vld [vmem:[#allocation8 + $0x14c] ss:$16 sps:$4 sm:$0xff]  }
  0x7c   :  { %931 = vmatpush1.bf16.msra.mxu1 %v2438_v45  ;;  %v2516_v45 = vld [vmem:[#allocation8 + $0x140] ss:$16 sps:$4 sm:$0xff]  }
  0x7d   :  { %457 = vmatpush2.bf16.msra.mxu0 %v2403_v36  ;;  %932 = vmatprep.subr.bf16.mxu1 %v2446_v47  ;;  %v2501_v36 = vld [vmem:[#allocation8 + $0x1a8] ss:$16 sps:$4 sm:$0xff]   ;;  %v2524_v47 = vld [vmem:[#allocation8 + $0x124] ss:$16 sps:$4 sm:$0xff]  }
  0x7e   :  { %458 = vmatprep.subr.bf16.mxu0 %v2405_v38  ;;  %v2507_v38 = vld [vmem:[#allocation8 + $0x188] ss:$16 sps:$4 sm:$0xff]  }
  0x80   :  { %933 = vmatpush1.bf16.msra.mxu1 %v2444_v49  ;;  %v2522_v49 = vld [vmem:[#allocation8 + $0x120] ss:$16 sps:$4 sm:$0xff]  }
  0x81   :  { %459 = vmatpush2.bf16.msra.mxu0 %v2409_v41  ;;  %934 = vmatprep.subr.bf16.mxu1 %v2452_v51  ;;  %v2515_v41 = vld [vmem:[#allocation8 + $0x16c] ss:$16 sps:$4 sm:$0xff]   ;;  %v2530_v51 = vld [vmem:[#allocation8 + $0x104] ss:$16 sps:$4 sm:$0xff]  }
  0x82   :  { %460 = vmatprep.subr.bf16.mxu0 %v2411_v43  ;;  %v2518_v43 = vld [vmem:[#allocation8 + $0x144] ss:$16 sps:$4 sm:$0xff]  }
  0x84   :  { %935 = vmatpush1.bf16.msra.mxu1 %v2450_v53  ;;  %v2528_v53 = vld [vmem:[#allocation8 + $0x100] ss:$16 sps:$4 sm:$0xff]  }
  0x85   :  { %461 = vmatpush2.bf16.msra.mxu0 %v2415_v46  ;;  %936 = vmatprep.subr.bf16.mxu1 %v2458_v55  ;;  %v2519_v46 = vld [vmem:[#allocation8 + $0x148] ss:$16 sps:$4 sm:$0xff]  }
  0x86   :  { %462 = vmatprep.subr.bf16.mxu0 %v2417_v48  ;;  %v2527_v48 = vld [vmem:[#allocation8 + $0x12c] ss:$16 sps:$4 sm:$0xff]  }
  0x88   :  { %937 = vmatpush1.bf16.msra.mxu1 %v2456_v57 }
  0x89   :  { %463 = vmatpush2.bf16.msra.mxu0 %v2421_v50  ;;  %938 = vmatprep.subr.bf16.mxu1 %v2464_v59  ;;  %v2525_v50 = vld [vmem:[#allocation8 + $0x128] ss:$16 sps:$4 sm:$0xff]  }
  0x8a   :  { %464 = vmatprep.subr.bf16.mxu0 %v2423_v52  ;;  %v2533_v52 = vld [vmem:[#allocation8 + $0x10c] ss:$16 sps:$4 sm:$0xff]  }
  0x8c   :  { %939 = vmatpush1.bf16.msra.mxu1 %v2462_v62  ;;  %v186_v62 = vld [vmem:[#allocation7] sm:$0x3] }
  0x8d   :  { %465 = vmatpush2.bf16.msra.mxu0 %v2427_v54  ;;  %940 = vmatprep.subr.bf16.mxu1 %v2470_v0  ;;  %v2531_v54 = vld [vmem:[#allocation8 + $0x108] ss:$16 sps:$4 sm:$0xff]  }
  0x8e   :  { %466 = vmatprep.subr.bf16.mxu0 %v2429_v56 }
  0x90   :  { %941 = vmatpush1.bf16.msra.mxu1 %v2468_v3 }
  0x91   :  { %467 = vmatpush2.bf16.msra.mxu0 %v2433_v58  ;;  %942 = vmatprep.subr.bf16.mxu1 %v2476_v5  ;;  %v188_v58 = vlaneseq }
  0x92   :  { %468 = vmatprep.subr.bf16.mxu0 %v2435_v60 }
  0x93   :  { %v3040_v60 = vshrl.u32 %v188_v58, 7 }
  0x94   :  { %943 = vmatpush1.bf16.msra.mxu1 %v2474_v7 }
  0x95   :  { %469 = vmatpush2.bf16.msra.mxu0 %v2437_v61  ;;  %944 = vmatprep.subr.bf16.mxu1 %v2482_v9  ;;  %v3043_v61 = vsub.s32 0, %v3040_v60  ;;  %v3046_v63 = vsub.s32 1, %v3040_v60 }
  0x96   :  { %971 = vmatprep.subr.bf16.mxu0 %v2443_v1 }
  0x97   :  { %v191_v0 = vrot.slane %v186_v62, %v3043_v61  ;;  %v195_v1 = vrot.slane %v186_v62, %v3046_v63 }
  0x98   :  { %471 = vmatmul.mubr.bf16.vlgmr.msra.gmra.mxu0 %v135_v2  ;;  %945 = vmatpush1.bf16.msra.mxu1 %v2480_v11 }
  0x99   :  { %972 = vmatpush1.bf16.msra.mxu0 %v2441_v4  ;;  %946 = vmatprep.subr.bf16.mxu1 %v2488_v13 }
  0x9a   :  { %973 = vmatprep.subr.bf16.mxu0 %v2449_v6 }
  0x9c   :  { %947 = vmatpush2.bf16.msra.mxu1 %v2486_v15  ;;  %v2536_v15 = vld [vmem:[#allocation11 + $0x74] ss:$8 sps:$4 sm:$0xff]  }
  0x9d   :  { %974 = vmatpush1.bf16.msra.mxu0 %v2447_v8  ;;  %948 = vmatprep.subr.bf16.mxu1 %v2494_v17  ;;  %v2539_v17 = vld [vmem:[#allocation11 + $0x174] ss:$8 sps:$4 sm:$0xff]  }
  0x9e   :  { %975 = vmatprep.subr.bf16.mxu0 %v2455_v10 }
  0xa0   :  { %949 = vmatpush2.bf16.msra.mxu1 %v2492_v19  ;;  %v2545_v19 = vld [vmem:[#allocation11 + $0x164] ss:$8 sps:$4 sm:$0xff]  }
  0xa1   :  { %976 = vmatpush1.bf16.msra.mxu0 %v2453_v12  ;;  %950 = vmatprep.subr.bf16.mxu1 %v2500_v21  ;;  %v2543_v21 = vld [vmem:[#allocation11 + $0x160] ss:$8 sps:$4 sm:$0xff]  }
  0xa2   :  { %977 = vmatprep.subr.bf16.mxu0 %v2461_v14  ;;  %v2534_v14 = vld [vmem:[#allocation11 + $0x70] ss:$8 sps:$4 sm:$0xff]  }
  0xa4   :  { %951 = vmatpush2.bf16.msra.mxu1 %v2498_v23  ;;  %v2551_v23 = vld [vmem:[#allocation11 + $0x154] ss:$8 sps:$4 sm:$0xff]  }
  0xa5   :  { %978 = vmatpush1.bf16.msra.mxu0 %v2459_v16  ;;  %952 = vmatprep.subr.bf16.mxu1 %v2506_v25  ;;  %v2537_v16 = vld [vmem:[#allocation11 + $0x170] ss:$8 sps:$4 sm:$0xff]  }
  0xa6   :  { %979 = vmatprep.subr.bf16.mxu0 %v2467_v18  ;;  %v2542_v18 = vld [vmem:[#allocation11 + $0x64] ss:$8 sps:$4 sm:$0xff]   ;;  %v2549_v25 = vld [vmem:[#allocation11 + $0x150] ss:$8 sps:$4 sm:$0xff]  }
  0xa8   :  { %953 = vmatpush2.bf16.msra.mxu1 %v2504_v27  ;;  %v2557_v27 = vld [vmem:[#allocation11 + $0x144] ss:$8 sps:$4 sm:$0xff]  }
  0xa9   :  { %980 = vmatpush1.bf16.msra.mxu0 %v2465_v20  ;;  %954 = vmatprep.subr.bf16.mxu1 %v2512_v40  ;;  %v2540_v20 = vld [vmem:[#allocation11 + $0x60] ss:$8 sps:$4 sm:$0xff]   ;;  %v2570_v40 = vld [vmem:[#allocation11 + $0x10] ss:$8 sps:$4 sm:$0xff]  }
  0xaa   :  { %981 = vmatprep.subr.bf16.mxu0 %v2473_v22  ;;  %v2548_v22 = vld [vmem:[#allocation11 + $0x54] ss:$8 sps:$4 sm:$0xff]  }
  0xac   :  { %955 = vmatpush2.bf16.msra.mxu1 %v2510_v39  ;;  %v2575_v39 = vld [vmem:[#allocation11 + $0x114] ss:$8 sps:$4 sm:$0xff]  }
  0xad   :  { %982 = vmatpush1.bf16.msra.mxu0 %v2471_v24  ;;  %956 = vmatprep.subr.bf16.mxu1 %v2518_v43  ;;  %v2546_v24 = vld [vmem:[#allocation11 + $0x50] ss:$8 sps:$4 sm:$0xff]   ;;  %v2581_v43 = vld [vmem:[#allocation11 + $0x104] ss:$8 sps:$4 sm:$0xff]  }
  0xae   :  { %983 = vmatprep.subr.bf16.mxu0 %v2479_v26  ;;  %v2554_v26 = vld [vmem:[#allocation11 + $0x44] ss:$8 sps:$4 sm:$0xff]  }
  0xb0   :  { %957 = vmatpush2.bf16.msra.mxu1 %v2516_v45  ;;  %v2579_v45 = vld [vmem:[#allocation11 + $0x100] ss:$8 sps:$4 sm:$0xff]  }
  0xb1   :  { %984 = vmatpush1.bf16.msra.mxu0 %v2477_v28  ;;  %958 = vmatprep.subr.bf16.mxu1 %v2524_v47  ;;  %v2552_v28 = vld [vmem:[#allocation11 + $0x40] ss:$8 sps:$4 sm:$0xff]   ;;  %v3054_v47 = vsub.s32 2, %v3040_v60 }
  0xb2   :  { %985 = vmatprep.subr.bf16.mxu0 %v2485_v29  ;;  %v2555_v29 = vld [vmem:[#allocation11 + $0x140] ss:$8 sps:$4 sm:$0xff]  }
  0xb4   :  { %959 = vmatpush2.bf16.msra.mxu1 %v2522_v49 }
  0xb5   :  { %986 = vmatpush1.bf16.msra.mxu0 %v2483_v30  ;;  %960 = vmatprep.subr.bf16.mxu1 %v2530_v51  ;;  %v2560_v30 = vld [vmem:[#allocation11 + $0x34] ss:$8 sps:$4 sm:$0xff]   ;;  %v3060_v51 = vsub.s32 3, %v3040_v60 }
  0xb6   :  { %987 = vmatprep.subr.bf16.mxu0 %v2491_v31  ;;  %v2563_v31 = vld [vmem:[#allocation11 + $0x134] ss:$8 sps:$4 sm:$0xff]  }
  0xb8   :  { %961 = vmatpush2.bf16.msra.mxu1 %v2528_v53 }
  0xb9   :  { %988 = vmatpush2.bf16.msra.mxu0 %v2489_v32  ;;  %1498 = vmatprep.subr.bf16.mxu1 %v2536_v15  ;;  %v2558_v32 = vld [vmem:[#allocation11 + $0x30] ss:$8 sps:$4 sm:$0xff]  }
  0xba   :  { %989 = vmatprep.subr.bf16.mxu0 %v2497_v33  ;;  %v2561_v33 = vld [vmem:[#allocation11 + $0x130] ss:$8 sps:$4 sm:$0xff]  }
  0xbb   :  { %v2582_v15 = vld [vmem:[#allocation11 + $0xf0] ss:$8 sps:$4 sm:$0xff]  }
  0xbd   :  { %990 = vmatpush2.bf16.msra.mxu0 %v2495_v34  ;;  %v2566_v34 = vld [vmem:[#allocation11 + $0x24] ss:$8 sps:$4 sm:$0xff]  }
  0xbe   :  { %991 = vmatprep.subr.bf16.mxu0 %v2503_v35  ;;  %v2569_v35 = vld [vmem:[#allocation11 + $0x124] ss:$8 sps:$4 sm:$0xff]  }
  0xc1   :  { %992 = vmatpush2.bf16.msra.mxu0 %v2501_v36  ;;  %v2564_v36 = vld [vmem:[#allocation11 + $0x20] ss:$8 sps:$4 sm:$0xff]  }
  0xc2   :  { %993 = vmatprep.subr.bf16.mxu0 %v2509_v37  ;;  %v2567_v37 = vld [vmem:[#allocation11 + $0x120] ss:$8 sps:$4 sm:$0xff]  }
  0xc5   :  { %994 = vmatpush2.bf16.msra.mxu0 %v2507_v38  ;;  %v2572_v38 = vld [vmem:[#allocation11 + $0x14] ss:$8 sps:$4 sm:$0xff]  }
  0xc6   :  { %995 = vmatprep.subr.bf16.mxu0 %v2515_v41  ;;  %v2573_v41 = vld [vmem:[#allocation11 + $0x110] ss:$8 sps:$4 sm:$0xff]  }
  0xc9   :  { %996 = vmatpush2.bf16.msra.mxu0 %v2513_v42  ;;  %v2578_v42 = vld [vmem:[#allocation11 + $0x4] ss:$8 sps:$4 sm:$0xff]  }
  0xca   :  { %997 = vmatprep.subr.bf16.mxu0 %v2521_v44  ;;  %v2576_v44 = vld [vmem:[#allocation11] ss:$8 sps:$4 sm:$0xff]  }
  0xcd   :  { %998 = vmatpush2.bf16.msra.mxu0 %v2519_v46  ;;  %v588_v46 = vld [vmem:[%s3120_s4] sm:$0xf] }
  0xce   :  { %999 = vmatprep.subr.bf16.mxu0 %v2527_v48  ;;  %v593_v48 = vrot.slane %v588_v46, %v3043_v61  ;;  %v601_v49 = vrot.slane %v588_v46, %v3054_v47 }
  0xd1   :  { %1000 = vmatpush2.bf16.msra.mxu0 %v2525_v50  ;;  %v597_v50 = vrot.slane %v588_v46, %v3046_v63 }
  0xd2   :  { %1001 = vmatprep.subr.bf16.mxu0 %v2533_v52 }
  0xd5   :  { %1002 = vmatpush2.bf16.msra.mxu0 %v2531_v54 }
  0xd6   :  { %1539 = vmatprep.subr.bf16.mxu0 %v2539_v17  ;;  %v2590_v17 = vld [vmem:[#allocation11 + $0xe4] ss:$8 sps:$4 sm:$0xff]  }
 0x13b   :  { %v513_v55 = vpop.f32.mrf.mxu1 }
 0x13d   :  { %v515_v56 = vpop.f32.mrf.mxu1 }
 0x13f   :  { %v517_v57 = vpop.f32.mrf.mxu1 }
 0x141   :  { %v518_v59 = vpop.f32.mrf.mxu1 }
 0x142   :  { %v605_v59 = vrot.slane %v588_v46, %v3060_v51  ;;  %v2635_v46 = vld [vmem:[#allocation13 + $0xec] ss:$16 sps:$4 sm:$0xff]  }
 0x158   :  { %v472_v2 = vpop.f32.mrf.mxu0 }
 0x159   :  { %v473_v3 = vadd.f32 %v472_v2, %v191_v0 }
 0x15a   :  { %v474_v4 = vpop.f32.mrf.mxu0 }
 0x15b   :  { %v514_v5 = vadd.f32 %v513_v55, %v473_v3  ;;  %v475_v6 = vadd.f32 %v474_v4, %v195_v1 }
 0x15c   :  { %v476_v7 = vpop.f32.mrf.mxu0 }
 0x15d   :  { %v516_v8 = vadd.f32 %v515_v56, %v475_v6  ;;  %v520_v9 = vmax.f32 %v514_v5, 0.0 }
 0x15e   :  { %v477_v10 = vpop.f32.mrf.mxu0 }
 0x15f   :  { %v521_v11 = vmax.f32 %v516_v8, 0.0  ;;  %v522_v13 = vpack.c.bf16 %v520_v9, %v520_v9 }
 0x161   :  { %v523_v12 = vpack.c.bf16 %v521_v11, %v521_v11 }
 0x163   :  { %962 = vmatprep.mubr.bf16.mxu1 %v523_v12  ;;  %1003 = vmatprep.mubr.bf16.mxu0 %v523_v12 }
 0x164   :  { %963 = vmatmul.mubr.bf16.vlgmr.msra.gmra.mxu1 %v522_v13  ;;  %1004 = vmatmul.mubr.bf16.vlgmr.msra.gmra.mxu0 %v522_v13  ;;  %v2584_v13 = vld [vmem:[#allocation11 + $0xf4] ss:$8 sps:$4 sm:$0xff]  }
 0x165   :  { %1499 = vmatpush1.bf16.msra.mxu1 %v2534_v14  ;;  %1540 = vmatpush1.bf16.msra.mxu0 %v2537_v16  ;;  %v2587_v14 = vld [vmem:[#allocation11 + $0x1f4] ss:$8 sps:$4 sm:$0xff]   ;;  %v2585_v16 = vld [vmem:[#allocation11 + $0x1f0] ss:$8 sps:$4 sm:$0xff]  }
 0x166   :  { %1500 = vmatprep.subr.bf16.mxu1 %v2542_v18  ;;  %1541 = vmatprep.subr.bf16.mxu0 %v2545_v19  ;;  %v2593_v18 = vld [vmem:[#allocation11 + $0x1e4] ss:$8 sps:$4 sm:$0xff]   ;;  %v2588_v19 = vld [vmem:[#allocation11 + $0xe0] ss:$8 sps:$4 sm:$0xff]  }
 0x169   :  { %1501 = vmatpush1.bf16.msra.mxu1 %v2540_v20  ;;  %1542 = vmatpush1.bf16.msra.mxu0 %v2543_v21  ;;  %v2591_v20 = vld [vmem:[#allocation11 + $0x1e0] ss:$8 sps:$4 sm:$0xff]   ;;  %v2596_v21 = vld [vmem:[#allocation11 + $0xd4] ss:$8 sps:$4 sm:$0xff]  }
 0x16a   :  { %1502 = vmatprep.subr.bf16.mxu1 %v2548_v22  ;;  %1543 = vmatprep.subr.bf16.mxu0 %v2551_v23  ;;  %v2599_v22 = vld [vmem:[#allocation11 + $0x1d4] ss:$8 sps:$4 sm:$0xff]   ;;  %v2594_v23 = vld [vmem:[#allocation11 + $0xd0] ss:$8 sps:$4 sm:$0xff]  }
 0x16d   :  { %1503 = vmatpush1.bf16.msra.mxu1 %v2546_v24  ;;  %1544 = vmatpush1.bf16.msra.mxu0 %v2549_v25  ;;  %v2597_v24 = vld [vmem:[#allocation11 + $0x1d0] ss:$8 sps:$4 sm:$0xff]   ;;  %v2600_v25 = vld [vmem:[#allocation11 + $0xc0] ss:$8 sps:$4 sm:$0xff]  }
 0x16e   :  { %1504 = vmatprep.subr.bf16.mxu1 %v2554_v26  ;;  %1545 = vmatprep.subr.bf16.mxu0 %v2557_v27  ;;  %v2602_v26 = vld [vmem:[#allocation11 + $0xc4] ss:$8 sps:$4 sm:$0xff]   ;;  %v2603_v27 = vld [vmem:[#allocation11 + $0x1c0] ss:$8 sps:$4 sm:$0xff]  }
 0x171   :  { %1505 = vmatpush1.bf16.msra.mxu1 %v2552_v28  ;;  %1546 = vmatpush1.bf16.msra.mxu0 %v2555_v29  ;;  %v2605_v28 = vld [vmem:[#allocation11 + $0x1c4] ss:$8 sps:$4 sm:$0xff]   ;;  %v2608_v29 = vld [vmem:[#allocation11 + $0xb4] ss:$8 sps:$4 sm:$0xff]  }
 0x172   :  { %1506 = vmatprep.subr.bf16.mxu1 %v2560_v30  ;;  %1547 = vmatprep.subr.bf16.mxu0 %v2563_v31  ;;  %v2611_v30 = vld [vmem:[#allocation11 + $0x1b4] ss:$8 sps:$4 sm:$0xff]   ;;  %v2606_v31 = vld [vmem:[#allocation11 + $0xb0] ss:$8 sps:$4 sm:$0xff]  }
 0x175   :  { %1507 = vmatpush1.bf16.msra.mxu1 %v2558_v32  ;;  %1548 = vmatpush1.bf16.msra.mxu0 %v2561_v33  ;;  %v2609_v32 = vld [vmem:[#allocation11 + $0x1b0] ss:$8 sps:$4 sm:$0xff]   ;;  %v2614_v33 = vld [vmem:[#allocation11 + $0xa4] ss:$8 sps:$4 sm:$0xff]  }
 0x176   :  { %1508 = vmatprep.subr.bf16.mxu1 %v2566_v34  ;;  %1549 = vmatprep.subr.bf16.mxu0 %v2569_v35  ;;  %v2617_v34 = vld [vmem:[#allocation11 + $0x1a4] ss:$8 sps:$4 sm:$0xff]   ;;  %v2612_v35 = vld [vmem:[#allocation11 + $0xa0] ss:$8 sps:$4 sm:$0xff]  }
 0x179   :  { %1509 = vmatpush1.bf16.msra.mxu1 %v2564_v36  ;;  %1550 = vmatpush1.bf16.msra.mxu0 %v2567_v37  ;;  %v2615_v36 = vld [vmem:[#allocation11 + $0x1a0] ss:$8 sps:$4 sm:$0xff]   ;;  %v2620_v37 = vld [vmem:[#allocation11 + $0x94] ss:$8 sps:$4 sm:$0xff]  }
 0x17a   :  { %1510 = vmatprep.subr.bf16.mxu1 %v2572_v38  ;;  %1551 = vmatprep.subr.bf16.mxu0 %v2575_v39  ;;  %v2623_v38 = vld [vmem:[#allocation11 + $0x194] ss:$8 sps:$4 sm:$0xff]   ;;  %v2618_v39 = vld [vmem:[#allocation11 + $0x90] ss:$8 sps:$4 sm:$0xff]  }
 0x17d   :  { %1511 = vmatpush1.bf16.msra.mxu1 %v2570_v40  ;;  %1552 = vmatpush1.bf16.msra.mxu0 %v2573_v41  ;;  %v2621_v40 = vld [vmem:[#allocation11 + $0x190] ss:$8 sps:$4 sm:$0xff]   ;;  %v2626_v41 = vld [vmem:[#allocation11 + $0x84] ss:$8 sps:$4 sm:$0xff]  }
 0x17e   :  { %1512 = vmatprep.subr.bf16.mxu1 %v2578_v42  ;;  %1553 = vmatprep.subr.bf16.mxu0 %v2581_v43  ;;  %v2629_v42 = vld [vmem:[#allocation11 + $0x184] ss:$8 sps:$4 sm:$0xff]   ;;  %v2624_v43 = vld [vmem:[#allocation11 + $0x80] ss:$8 sps:$4 sm:$0xff]  }
 0x181   :  { %1513 = vmatpush1.bf16.msra.mxu1 %v2576_v44  ;;  %1554 = vmatpush1.bf16.msra.mxu0 %v2579_v45  ;;  %v2627_v44 = vld [vmem:[#allocation11 + $0x180] ss:$8 sps:$4 sm:$0xff]   ;;  %v2632_v45 = vld [vmem:[#allocation13 + $0xe4] ss:$16 sps:$4 sm:$0xff]  }
 0x182   :  { %1514 = vmatprep.subr.bf16.mxu1 %v2584_v13  ;;  %1555 = vmatprep.subr.bf16.mxu0 %v2587_v14 }
 0x185   :  { %1515 = vmatpush2.bf16.msra.mxu1 %v2582_v15  ;;  %1556 = vmatpush2.bf16.msra.mxu0 %v2585_v16 }
 0x186   :  { %1516 = vmatprep.subr.bf16.mxu1 %v2590_v17  ;;  %1557 = vmatprep.subr.bf16.mxu0 %v2593_v18 }
 0x189   :  { %1517 = vmatpush2.bf16.msra.mxu1 %v2588_v19  ;;  %1558 = vmatpush2.bf16.msra.mxu0 %v2591_v20 }
 0x18a   :  { %1518 = vmatprep.subr.bf16.mxu1 %v2596_v21  ;;  %1559 = vmatprep.subr.bf16.mxu0 %v2599_v22 }
 0x18d   :  { %1519 = vmatpush2.bf16.msra.mxu1 %v2594_v23  ;;  %1560 = vmatpush2.bf16.msra.mxu0 %v2597_v24 }
 0x18e   :  { %1520 = vmatprep.subr.bf16.mxu1 %v2602_v26  ;;  %1561 = vmatprep.subr.bf16.mxu0 %v2605_v28  ;;  %v2630_v26 = vld [vmem:[#allocation13 + $0xe0] ss:$16 sps:$4 sm:$0xff]   ;;  %v2638_v28 = vld [vmem:[#allocation13 + $0xc4] ss:$16 sps:$4 sm:$0xff]  }
 0x191   :  { %1521 = vmatpush2.bf16.msra.mxu1 %v2600_v25  ;;  %1562 = vmatpush2.bf16.msra.mxu0 %v2603_v27  ;;  %v2633_v27 = vld [vmem:[#allocation13 + $0xe8] ss:$16 sps:$4 sm:$0xff]  }
 0x192   :  { %1522 = vmatprep.subr.bf16.mxu1 %v2608_v29  ;;  %1563 = vmatprep.subr.bf16.mxu0 %v2611_v30  ;;  %v2641_v29 = vld [vmem:[#allocation13 + $0xcc] ss:$16 sps:$4 sm:$0xff]   ;;  %v2636_v30 = vld [vmem:[#allocation13 + $0xc0] ss:$16 sps:$4 sm:$0xff]  }
 0x195   :  { %1523 = vmatpush2.bf16.msra.mxu1 %v2606_v31  ;;  %1564 = vmatpush2.bf16.msra.mxu0 %v2609_v32  ;;  %v2639_v31 = vld [vmem:[#allocation13 + $0xc8] ss:$16 sps:$4 sm:$0xff]   ;;  %v2644_v32 = vld [vmem:[#allocation13 + $0xa4] ss:$16 sps:$4 sm:$0xff]  }
 0x196   :  { %1524 = vmatprep.subr.bf16.mxu1 %v2614_v33  ;;  %1565 = vmatprep.subr.bf16.mxu0 %v2617_v34  ;;  %v2647_v33 = vld [vmem:[#allocation13 + $0xac] ss:$16 sps:$4 sm:$0xff]   ;;  %v2642_v34 = vld [vmem:[#allocation13 + $0xa0] ss:$16 sps:$4 sm:$0xff]  }
 0x199   :  { %1525 = vmatpush2.bf16.msra.mxu1 %v2612_v35  ;;  %1566 = vmatpush2.bf16.msra.mxu0 %v2615_v36  ;;  %v2645_v35 = vld [vmem:[#allocation13 + $0xa8] ss:$16 sps:$4 sm:$0xff]   ;;  %v2650_v36 = vld [vmem:[#allocation13 + $0x84] ss:$16 sps:$4 sm:$0xff]  }
 0x19a   :  { %1526 = vmatprep.subr.bf16.mxu1 %v2620_v37  ;;  %1567 = vmatprep.subr.bf16.mxu0 %v2623_v38  ;;  %v2653_v37 = vld [vmem:[#allocation13 + $0x8c] ss:$16 sps:$4 sm:$0xff]   ;;  %v2648_v38 = vld [vmem:[#allocation13 + $0x80] ss:$16 sps:$4 sm:$0xff]  }
 0x19d   :  { %1527 = vmatpush2.bf16.msra.mxu1 %v2618_v39  ;;  %1568 = vmatpush2.bf16.msra.mxu0 %v2621_v40  ;;  %v2651_v39 = vld [vmem:[#allocation13 + $0x88] ss:$16 sps:$4 sm:$0xff]   ;;  %v2656_v40 = vld [vmem:[#allocation13 + $0x64] ss:$16 sps:$4 sm:$0xff]  }
 0x19e   :  { %1528 = vmatprep.subr.bf16.mxu1 %v2626_v41  ;;  %1569 = vmatprep.subr.bf16.mxu0 %v2629_v42  ;;  %v2659_v41 = vld [vmem:[#allocation13 + $0x6c] ss:$16 sps:$4 sm:$0xff]   ;;  %v2654_v42 = vld [vmem:[#allocation13 + $0x60] ss:$16 sps:$4 sm:$0xff]  }
 0x1a1   :  { %1529 = vmatpush2.bf16.msra.mxu1 %v2624_v43  ;;  %1570 = vmatpush2.bf16.msra.mxu0 %v2627_v44  ;;  %v2657_v43 = vld [vmem:[#allocation13 + $0x68] ss:$16 sps:$4 sm:$0xff]   ;;  %v2662_v44 = vld [vmem:[#allocation13 + $0x44] ss:$16 sps:$4 sm:$0xff]  }
 0x1a2   :  { %1990 = vmatprep.subr.bf16.mxu1 %v2632_v45  ;;  %2031 = vmatprep.subr.bf16.mxu0 %v2635_v46  ;;  %v2665_v45 = vld [vmem:[#allocation13 + $0x4c] ss:$16 sps:$4 sm:$0xff]   ;;  %v2660_v46 = vld [vmem:[#allocation13 + $0x40] ss:$16 sps:$4 sm:$0xff]  }
 0x224   :  { %v964_v52 = vpop.f32.mrf.mxu1  ;;  %v1005_v53 = vpop.f32.mrf.mxu0 }
 0x225   :  { %v3062_v54 = vadd.f32 %v964_v52, %v593_v48  ;;  %v3064_v57 = vadd.f32 %v1005_v53, %v601_v49 }
 0x226   :  { %v966_v55 = vpop.f32.mrf.mxu1  ;;  %v1007_v56 = vpop.f32.mrf.mxu0 }
 0x227   :  { %v3066_v58 = vadd.f32 %v966_v55, %v597_v50  ;;  %v1019_v1 = vmul.f32 %v3062_v54, %v3062_v54  ;;  %v1021_v5 = vmul.f32 %v3064_v57, %v3064_v57  ;;  %v3077_v6 = vadd.f32 %v1007_v56, %v605_v59 }
 0x228   :  { %v968_v62 = vpop.f32.mrf.mxu1  ;;  %v1009_v0 = vpop.f32.mrf.mxu0 }
 0x229   :  { %v1020_v60 = vmul.f32 %v3066_v58, %v3066_v58  ;;  %v1012_v2 = vadd.f32 %v3066_v58, %v3062_v54  ;;  %v1022_v11 = vmul.f32 %v3077_v6, %v3077_v6  ;;  %v1042_v62 = vld [vmem:[%s3121_s5] sm:$0xf]  ;;  %v1068_v0 = vld [vmem:[#allocation10] sm:$0xf] }
 0x22a   :  { %v969_v3 = vpop.f32.mrf.mxu1  ;;  %v1010_v4 = vpop.f32.mrf.mxu0  ;;  %v1081_v13 = vrot.slane %v1068_v0, %v3054_v47 }
 0x22b   :  { %v1013_v7 = vadd.f32 %v1012_v2, %v3064_v57  ;;  %v1023_v8 = vadd.f32 %v1020_v60, %v1019_v1  ;;  %v1051_v1 = vrot.slane %v1042_v62, %v3046_v63  ;;  %v1059_v60 = vrot.slane %v1042_v62, %v3060_v51 }
 0x22c   :  { %v1047_v2 = vrot.slane %v1042_v62, %v3043_v61  ;;  %v1055_v3 = vrot.slane %v1042_v62, %v3054_v47  ;;  %v2675_v62 = vld [vmem:[#allocation13 + $0x8] ss:$16 sps:$4 sm:$0xff]  }
 0x22d   :  { %v1014_v9 = vadd.f32 %v1013_v7, %v3077_v6  ;;  %v1024_v10 = vadd.f32 %v1023_v8, %v1021_v5 }
 0x22f   :  { %1015 = vadd.xlane.f32.xlu0 %v1014_v9  ;;  %v1025_v12 = vadd.f32 %v1024_v10, %v1022_v11  ;;  %v1077_v10 = vrot.slane %v1068_v0, %v3046_v63  ;;  %v1085_v11 = vrot.slane %v1068_v0, %v3060_v51 }
 0x233   :  { %1026 = vadd.xlane.f32.xlu0 %v1025_v12  ;;  %v1073_v12 = vrot.slane %v1068_v0, %v3043_v61  ;;  %v2680_v0 = vld [vmem:[#allocation13 + $0x1e4] ss:$16 sps:$4 sm:$0xff]  }
 0x2b8   :  { %v1016_v48 = vpop.xlane.xlu0 %1015 }
 0x2b9   :  { %v1018_v49 = vmul.f32 0.001953125, %v1016_v48  ;;  %v2663_v48 = vld [vmem:[#allocation13 + $0x48] ss:$16 sps:$4 sm:$0xff]  }
 0x2bb   :  { %v1029_v52 = vmul.f32 %v1018_v49, %v1018_v49  ;;  %v1032_v4 = vsub.f32 %v3062_v54, %v1018_v49  ;;  %v1034_v5 = vsub.f32 %v3064_v57, %v1018_v49  ;;  %v1033_v7 = vsub.f32 %v3066_v58, %v1018_v49 }
 0x2bc   :  { %v1027_v50 = vpop.xlane.xlu0 %1026  ;;  %v1035_v8 = vsub.f32 %v3077_v6, %v1018_v49  ;;  %v2668_v49 = vld [vmem:[#allocation13 + $0x24] ss:$16 sps:$4 sm:$0xff]  }
 0x2bd   :  { %v1028_v53 = vmul.f32 0.001953125, %v1027_v50  ;;  %v2671_v50 = vld [vmem:[#allocation13 + $0x2c] ss:$16 sps:$4 sm:$0xff]  }
 0x2bf   :  { %v1030_v55 = vsub.f32 %v1028_v53, %v1029_v52  ;;  %v2666_v52 = vld [vmem:[#allocation13 + $0x20] ss:$16 sps:$4 sm:$0xff]   ;;  %v2669_v53 = vld [vmem:[#allocation13 + $0x28] ss:$16 sps:$4 sm:$0xff]  }
 0x2c1   :  { %v1031_v56 = vmax.f32 %v1030_v55, 0.0  ;;  %v2674_v55 = vld [vmem:[#allocation13 + $0x4] ss:$16 sps:$4 sm:$0xff]  }
 0x2c3   :  { %v1036_v59 = vadd.f32 1e-05, %v1031_v56  ;;  %v2677_v56 = vld [vmem:[#allocation13 + $0xc] ss:$16 sps:$4 sm:$0xff]  }
 0x2c5   :  { %2726 = vrsqrt.f32 %v1036_v59  ;;  %v2672_v59 = vld [vmem:[#allocation13] ss:$16 sps:$4 sm:$0xff]  }
 0x2d2   :  { %v2727_v9 = vpop.eup %2726 }
 0x2d3   :  { %v1039_v14 = vmul.f32 %v2727_v9, %v1033_v7  ;;  %v1041_v15 = vmul.f32 %v2727_v9, %v1035_v8  ;;  %v1038_v16 = vmul.f32 %v2727_v9, %v1032_v4  ;;  %v1040_v17 = vmul.f32 %v2727_v9, %v1034_v5  ;;  %v2689_v4 = vld [vmem:[#allocation13 + $0x1cc] ss:$16 sps:$4 sm:$0xff]   ;;  %v2684_v5 = vld [vmem:[#allocation13 + $0x1c0] ss:$16 sps:$4 sm:$0xff]   ;;  %v2687_v7 = vld [vmem:[#allocation13 + $0x1c8] ss:$16 sps:$4 sm:$0xff]  }
 0x2d4   :  { %v2692_v8 = vld [vmem:[#allocation13 + $0x1a4] ss:$16 sps:$4 sm:$0xff]   ;;  %v2695_v9 = vld [vmem:[#allocation13 + $0x1ac] ss:$16 sps:$4 sm:$0xff]  }
 0x2d5   :  { %v1065_v54 = vmul.f32 %v1051_v1, %v1039_v14  ;;  %v1067_v18 = vmul.f32 %v1059_v60, %v1041_v15  ;;  %v1064_v57 = vmul.f32 %v1047_v2, %v1038_v16  ;;  %v1066_v19 = vmul.f32 %v1055_v3, %v1040_v17  ;;  %v2683_v1 = vld [vmem:[#allocation13 + $0x1ec] ss:$16 sps:$4 sm:$0xff]   ;;  %v2678_v60 = vld [vmem:[#allocation13 + $0x1e0] ss:$16 sps:$4 sm:$0xff]   ;;  %v2681_v2 = vld [vmem:[#allocation13 + $0x1e8] ss:$16 sps:$4 sm:$0xff]  }
 0x2d6   :  { %v2686_v3 = vld [vmem:[#allocation13 + $0x1c4] ss:$16 sps:$4 sm:$0xff]   ;;  %v2696_v14 = vld [vmem:[#allocation13 + $0x180] ss:$16 sps:$4 sm:$0xff]   ;;  %v2699_v15 = vld [vmem:[#allocation13 + $0x188] ss:$16 sps:$4 sm:$0xff]  }
 0x2d7   :  { %v1091_v58 = vadd.f32 %v1077_v10, %v1065_v54  ;;  %v1093_v20 = vadd.f32 %v1085_v11, %v1067_v18  ;;  %v1090_v6 = vadd.f32 %v1073_v12, %v1064_v57  ;;  %v1092_v21 = vadd.f32 %v1081_v13, %v1066_v19  ;;  %v2690_v10 = vld [vmem:[#allocation13 + $0x1a0] ss:$16 sps:$4 sm:$0xff]   ;;  %v2693_v11 = vld [vmem:[#allocation13 + $0x1a8] ss:$16 sps:$4 sm:$0xff]   ;;  %v2698_v12 = vld [vmem:[#allocation13 + $0x184] ss:$16 sps:$4 sm:$0xff]  }
 0x2d8   :  { %v2701_v13 = vld [vmem:[#allocation13 + $0x18c] ss:$16 sps:$4 sm:$0xff]   ;;  %v2704_v16 = vld [vmem:[#allocation13 + $0x164] ss:$16 sps:$4 sm:$0xff]   ;;  %v2702_v54 = vld [vmem:[#allocation13 + $0x160] ss:$16 sps:$4 sm:$0xff]  }
 0x2d9   :  { %1095 = vst [vmem:[#allocation14 + $0x8] sm:$0xff] %v1091_v58  ;;  %v1099_v22 = vpack.c.bf16 %v1091_v58, %v1091_v58  ;;  %1097 = vst [vmem:[#allocation14 + $0x18] sm:$0xff] %v1093_v20  ;;  %v1101_v23 = vpack.c.bf16 %v1093_v20, %v1093_v20  ;;  %v1098_v24 = vpack.c.bf16 %v1090_v6, %v1090_v6  ;;  %v2707_v17 = vld [vmem:[#allocation13 + $0x16c] ss:$16 sps:$4 sm:$0xff]   ;;  %v2705_v18 = vld [vmem:[#allocation13 + $0x168] ss:$16 sps:$4 sm:$0xff]  }
 0x2da   :  { %1094 = vst [vmem:[#allocation14] sm:$0xff] %v1090_v6  ;;  %v1100_v25 = vpack.c.bf16 %v1092_v21, %v1092_v21  ;;  %1096 = vst [vmem:[#allocation14 + $0x10] sm:$0xff] %v1092_v21  ;;  %v2710_v57 = vld [vmem:[#allocation13 + $0x144] ss:$16 sps:$4 sm:$0xff]   ;;  %v2713_v19 = vld [vmem:[#allocation13 + $0x14c] ss:$16 sps:$4 sm:$0xff]  }
 0x2db   :  { %1530 = vmatprep.mubr.bf16.mxu1 %v1099_v22  ;;  %1571 = vmatprep.mubr.bf16.mxu0 %v1101_v23  ;;  %v2708_v58 = vld [vmem:[#allocation13 + $0x140] ss:$16 sps:$4 sm:$0xff]   ;;  %v2711_v20 = vld [vmem:[#allocation13 + $0x148] ss:$16 sps:$4 sm:$0xff]   ;;  %v2716_v6 = vld [vmem:[#allocation13 + $0x124] ss:$16 sps:$4 sm:$0xff]  }
 0x2dc   :  { %1531 = vmatmul.mubr.bf16.vlgmr.msra.gmra.mxu1 %v1098_v24  ;;  %1572 = vmatmul.mubr.bf16.vlgmr.msra.gmra.mxu0 %v1100_v25  ;;  %v2719_v21 = vld [vmem:[#allocation13 + $0x12c] ss:$16 sps:$4 sm:$0xff]   ;;  %v2714_v22 = vld [vmem:[#allocation13 + $0x120] ss:$16 sps:$4 sm:$0xff]   ;;  %v2717_v23 = vld [vmem:[#allocation13 + $0x128] ss:$16 sps:$4 sm:$0xff]  }
 0x2dd   :  { %1991 = vmatpush1.bf16.msra.mxu1 %v2630_v26  ;;  %2032 = vmatpush1.bf16.msra.mxu0 %v2633_v27  ;;  %v2722_v24 = vld [vmem:[#allocation13 + $0x104] ss:$16 sps:$4 sm:$0xff]   ;;  %v2725_v25 = vld [vmem:[#allocation13 + $0x10c] ss:$16 sps:$4 sm:$0xff]   ;;  %v2720_v26 = vld [vmem:[#allocation13 + $0x100] ss:$16 sps:$4 sm:$0xff]  }
 0x2de   :  { %1992 = vmatprep.subr.bf16.mxu1 %v2638_v28  ;;  %2033 = vmatprep.subr.bf16.mxu0 %v2641_v29  ;;  %v2723_v27 = vld [vmem:[#allocation13 + $0x108] ss:$16 sps:$4 sm:$0xff]   ;;  %v1166_v28 = vld [vmem:[%s3124_s8] sm:$0x3]  ;;  %s2940_s8 = smov [#allocation14]  }
 0x2df   :  { %v1171_v29 = vrot.slane %v1166_v28, %v3043_v61  ;;  %s2086_s20 = sshll.u32 %s2940_s8, 4  ;;  %s2087_s20 = int_to_ptr.vmem [resolvable:$true] %s2086_s20 }
 0x2e0   :  { %s2876_s21 = scalar_lea.vmem %s2087_s20, 512  ;;  %p2881_p8 = scmp.lt.s32.totalorder %s2087_s20, %s2087_s20 }
 0x2e1   :  { %1993 = vmatpush1.bf16.msra.mxu1 %v2636_v30  ;;  %2034 = vmatpush1.bf16.msra.mxu0 %v2639_v31  ;;  %v1175_v30 = vrot.slane %v1166_v28, %v3046_v63  ;;  %p2877_p7 = scmp.ne.s32.totalorder %s2087_s20, %s2876_s21  ;;  %p2882_p9 = scmp.lt.s32.totalorder %s2876_s21, %s2876_s21 }
 0x2e2   :  { %1994 = vmatprep.subr.bf16.mxu1 %v2644_v32  ;;  %2035 = vmatprep.subr.bf16.mxu0 %v2647_v33 }
 0x2e3   :  { %p2883_p10 = por %p2882_p9, %p2881_p8 }
 0x2e5   :  { %1995 = vmatpush1.bf16.msra.mxu1 %v2642_v34  ;;  %2036 = vmatpush1.bf16.msra.mxu0 %v2645_v35  ;;  %p2884_p11 = pnand %p2883_p10, %p2877_p7 }
 0x2e6   :  { %1996 = vmatprep.subr.bf16.mxu1 %v2650_v36  ;;  %2037 = vmatprep.subr.bf16.mxu0 %v2653_v37 }
 0x2e9   :  { %1997 = vmatpush1.bf16.msra.mxu1 %v2648_v38  ;;  %2038 = vmatpush1.bf16.msra.mxu0 %v2651_v39 }
 0x2ea   :  { %1998 = vmatprep.subr.bf16.mxu1 %v2656_v40  ;;  %2039 = vmatprep.subr.bf16.mxu0 %v2659_v41 }
 0x2ed   :  { %1999 = vmatpush1.bf16.msra.mxu1 %v2654_v42  ;;  %2040 = vmatpush1.bf16.msra.mxu0 %v2657_v43 }
 0x2ee   :  { %2000 = vmatprep.subr.bf16.mxu1 %v2662_v44  ;;  %2041 = vmatprep.subr.bf16.mxu0 %v2665_v45 }
 0x2f1   :  { %2001 = vmatpush1.bf16.msra.mxu1 %v2660_v46  ;;  %2042 = vmatpush1.bf16.msra.mxu0 %v2663_v48 }
 0x2f2   :  { %2002 = vmatprep.subr.bf16.mxu1 %v2668_v49  ;;  %2043 = vmatprep.subr.bf16.mxu0 %v2671_v50 }
 0x2f5   :  { %2003 = vmatpush1.bf16.msra.mxu1 %v2666_v52  ;;  %2044 = vmatpush1.bf16.msra.mxu0 %v2669_v53 }
 0x2f6   :  { %2004 = vmatprep.subr.bf16.mxu1 %v2674_v55  ;;  %2045 = vmatprep.subr.bf16.mxu0 %v2677_v56 }
 0x2f9   :  { %2005 = vmatpush1.bf16.msra.mxu1 %v2672_v59  ;;  %2046 = vmatpush1.bf16.msra.mxu0 %v2675_v62 }
 0x2fa   :  { %2006 = vmatprep.subr.bf16.mxu1 %v2680_v0  ;;  %2047 = vmatprep.subr.bf16.mxu0 %v2683_v1 }
 0x2fd   :  { %2007 = vmatpush2.bf16.msra.mxu1 %v2678_v60  ;;  %2048 = vmatpush2.bf16.msra.mxu0 %v2681_v2 }
 0x2fe   :  { %2008 = vmatprep.subr.bf16.mxu1 %v2686_v3  ;;  %2049 = vmatprep.subr.bf16.mxu0 %v2689_v4 }
 0x301   :  { %2009 = vmatpush2.bf16.msra.mxu1 %v2684_v5  ;;  %2050 = vmatpush2.bf16.msra.mxu0 %v2687_v7 }
 0x302   :  { %2010 = vmatprep.subr.bf16.mxu1 %v2692_v8  ;;  %2051 = vmatprep.subr.bf16.mxu0 %v2695_v9 }
 0x305   :  { %2011 = vmatpush2.bf16.msra.mxu1 %v2690_v10  ;;  %2052 = vmatpush2.bf16.msra.mxu0 %v2693_v11 }
 0x306   :  { %2012 = vmatprep.subr.bf16.mxu1 %v2698_v12  ;;  %2053 = vmatprep.subr.bf16.mxu0 %v2701_v13 }
 0x309   :  { %2013 = vmatpush2.bf16.msra.mxu1 %v2696_v14  ;;  %2054 = vmatpush2.bf16.msra.mxu0 %v2699_v15 }
 0x30a   :  { %2014 = vmatprep.subr.bf16.mxu1 %v2704_v16  ;;  %2055 = vmatprep.subr.bf16.mxu0 %v2707_v17 }
 0x30d   :  { %2015 = vmatpush2.bf16.msra.mxu1 %v2702_v54  ;;  %2056 = vmatpush2.bf16.msra.mxu0 %v2705_v18 }
 0x30e   :  { %2016 = vmatprep.subr.bf16.mxu1 %v2710_v57  ;;  %2057 = vmatprep.subr.bf16.mxu0 %v2713_v19 }
 0x311   :  { %2017 = vmatpush2.bf16.msra.mxu1 %v2708_v58  ;;  %2058 = vmatpush2.bf16.msra.mxu0 %v2711_v20 }
 0x312   :  { %2018 = vmatprep.subr.bf16.mxu1 %v2716_v6  ;;  %2059 = vmatprep.subr.bf16.mxu0 %v2719_v21 }
 0x315   :  { %2019 = vmatpush2.bf16.msra.mxu1 %v2714_v22  ;;  %2060 = vmatpush2.bf16.msra.mxu0 %v2717_v23 }
 0x316   :  { %2020 = vmatprep.subr.bf16.mxu1 %v2722_v24  ;;  %2061 = vmatprep.subr.bf16.mxu0 %v2725_v25 }
 0x319   :  { %2021 = vmatpush2.bf16.msra.mxu1 %v2720_v26  ;;  %2062 = vmatpush2.bf16.msra.mxu0 %v2723_v27 }
 0x39c   :  { %v1532_v31 = vpop.f32.mrf.mxu1  ;;  %v1573_v32 = vpop.f32.mrf.mxu0 }
 0x39d   :  { %v1533_v33 = vadd.f32 %v1532_v31, %v1171_v29 }
 0x39e   :  { %v1534_v34 = vpop.f32.mrf.mxu1  ;;  %v1575_v35 = vpop.f32.mrf.mxu0 }
 0x39f   :  { %v1574_v36 = vadd.f32 %v1573_v32, %v1533_v33  ;;  %v1535_v37 = vadd.f32 %v1534_v34, %v1175_v30 }
 0x3a0   :  { %v1536_v38 = vpop.f32.mrf.mxu1  ;;  %v1577_v39 = vpop.f32.mrf.mxu0 }
 0x3a1   :  { %v1576_v40 = vadd.f32 %v1575_v35, %v1535_v37  ;;  %v1580_v41 = vmax.f32 %v1574_v36, 0.0 }
 0x3a2   :  { %v1537_v42 = vpop.f32.mrf.mxu1  ;;  %v1578_v43 = vpop.f32.mrf.mxu0 }
 0x3a3   :  { %v1581_v44 = vmax.f32 %v1576_v40, 0.0  ;;  %v1582_v46 = vpack.c.bf16 %v1580_v41, %v1580_v41 }
 0x3a5   :  { %v1583_v45 = vpack.c.bf16 %v1581_v44, %v1581_v44 }
 0x3a7   :  { %2022 = vmatprep.mubr.bf16.mxu1 %v1583_v45  ;;  %2063 = vmatprep.mubr.bf16.mxu0 %v1583_v45 }
 0x3a8   :  { %2023 = vmatmul.mubr.bf16.vlgmr.msra.gmra.mxu1 %v1582_v46  ;;  %2064 = vmatmul.mubr.bf16.vlgmr.msra.gmra.mxu0 %v1582_v46 }
 0x3a9   :  { %2887 = shalt.err (!%p2884_p11)
}
 0x3aa   :  { %2089 = dma.vmem_to_hbm [thread:$0]  %s2087_s20, 512, %s3127_s11, [#allocation4]   ;;  %v1648_v48 = vld [vmem:[%s3126_s10] sm:$0xf] }
 0x3ab   :  { %v1653_v49 = vrot.slane %v1648_v48, %v3043_v61  ;;  %v1661_v50 = vrot.slane %v1648_v48, %v3054_v47  ;;  %v1657_v52 = vrot.slane %v1648_v48, %v3046_v63  ;;  %v1665_v53 = vrot.slane %v1648_v48, %v3060_v51  ;;  %s2941_s10 = smov [#allocation15]  }
 0x3ac   :  { %s2096_s11 = sshll.u32 %s2941_s10, 4  ;;  %s2097_s11 = int_to_ptr.vmem [resolvable:$true] %s2096_s11 }
 0x3ad   :  { %s2896_s27 = scalar_lea.vmem %s2097_s11, 512  ;;  %p2901_p13 = scmp.lt.s32.totalorder %s2097_s11, %s2097_s11 }
 0x3ae   :  { %p2897_p12 = scmp.ne.s32.totalorder %s2097_s11, %s2896_s27  ;;  %p2902_p0 = scmp.lt.s32.totalorder %s2896_s27, %s2896_s27 }
 0x3b0   :  { %p2903_p1 = por %p2902_p0, %p2901_p13 }
 0x3b2   :  { %p2904_p2 = pnand %p2903_p1, %p2897_p12 }
 0x468   :  { %v2024_v55 = vpop.f32.mrf.mxu1  ;;  %v2065_v56 = vpop.f32.mrf.mxu0 }
 0x469   :  { %v2025_v59 = vadd.f32 %v2024_v55, %v1653_v49  ;;  %v2066_v62 = vadd.f32 %v2065_v56, %v1661_v50 }
 0x46a   :  { %v2026_v0 = vpop.f32.mrf.mxu1  ;;  %v2067_v1 = vpop.f32.mrf.mxu0 }
 0x46b   :  { %2728 = vtanh.f32 %v2025_v59  ;;  %v2027_v60 = vadd.f32 %v2026_v0, %v1657_v52  ;;  %v2068_v2 = vadd.f32 %v2067_v1, %v1665_v53 }
 0x46c   :  { %2730 = vtanh.f32 %v2066_v62  ;;  %v2028_v3 = vpop.f32.mrf.mxu1  ;;  %v2069_v4 = vpop.f32.mrf.mxu0 }
 0x46d   :  { %2732 = vtanh.f32 %v2027_v60 }
 0x46e   :  { %2734 = vtanh.f32 %v2068_v2  ;;  %v2029_v61 = vpop.f32.mrf.mxu1  ;;  %v2070_v47 = vpop.f32.mrf.mxu0 }
 0x478   :  { %v2729_v63 = vpop.eup %2728 }
 0x479   :  { %v2731_v51 = vpop.eup %2730  ;;  %2076 = vst [vmem:[#allocation15] sm:$0xff] %v2729_v63 }
 0x47a   :  { %v2733_v5 = vpop.eup %2732  ;;  %2078 = vst [vmem:[#allocation15 + $0x10] sm:$0xff] %v2731_v51 }
 0x47b   :  { %v2735_v7 = vpop.eup %2734  ;;  %2077 = vst [vmem:[#allocation15 + $0x8] sm:$0xff] %v2733_v5 }
 0x47c   :  { %2079 = vst [vmem:[#allocation15 + $0x18] sm:$0xff] %v2735_v7 }
 0x47d   :  { %2907 = shalt.err (!%p2904_p2)
}
 0x47e   :  { %2099 = dma.vmem_to_hbm [thread:$0]  %s2097_s11, 512, %s3128_s12, [#allocation16]  }
 0x47f   :  { %2924 = dma.done.wait [#allocation4], 512  }
 0x480   :  { %2925 = vsyncadd [#allocation4], 4294966784 }
 0x481   :  { %2926 = dma.done.wait [#allocation16], 512  }
 0x482   :  { %2927 = vsyncadd [#allocation16], 4294966784 }
 0x483   :  { %2106 = vsyncpa [#allocation3], 1 }
 0x484   :  { %2107 = vsyncpa [#allocation6], 1 }
 0x485   :  { %2108 = vsyncpa [#allocation9], 1 }
 0x486   :  { %2109 = vsyncpa [#allocation12], 1 }
 0x487   :  { %2110 = vsyncpa [#allocation4], 1 }
 0x488   :  { %2111 = vsyncpa [#allocation16], 1 }

</bundles_post_ra>
